<compile_context>
chip_gen: v7x
topology: tpu7x:2x2x1
jax: 0.10.0
libtpu: 0.0.40
codegen_flags: <defaults>
</compile_context>

<pallas_src>
import jax
import jax.numpy as jnp
from jax.experimental import pallas as pl
from jax.experimental.pallas import tpu as pltpu


def _conv2_kernel(xp_ref, w3_ref, w1_ref, scale_ref, shift_ref, o_ref):
    # xp_ref   : (H+2, W+2, C1)  zero-padded NHWC input block (batch dim squeezed)
    # w3_ref   : (9, C1, C2)     3x3 conv taps, tap index = kh*3 + kw
    # w1_ref   : (C1, C2)        parallel 1x1 conv (cv2)
    # scale_ref: (1, C2)         fused BN scale  = gamma / sqrt(var + eps)
    # shift_ref: (1, C2)         fused BN shift  = beta - mean * scale
    # o_ref    : (H, W, C2)
    H, W, C2 = o_ref.shape
    C1 = xp_ref.shape[-1]

    xp = xp_ref[...]                                    # load padded block once
    acc = jnp.zeros((H * W, C2), jnp.float32)

    # 3x3 "same" convolution: 9 shifted MXU matmuls (channels on lanes).
    for kh in range(3):
        for kw in range(3):
            xs = xp[kh:kh + H, kw:kw + W, :].reshape(H * W, C1)
            acc = acc + jnp.dot(xs, w3_ref[kh * 3 + kw],
                                preferred_element_type=jnp.float32)

    # Parallel 1x1 branch (cv2) on the unshifted input (= centre window).
    x_c = xp[1:1 + H, 1:1 + W, :].reshape(H * W, C1)
    acc = acc + jnp.dot(x_c, w1_ref[...], preferred_element_type=jnp.float32)

    # BatchNorm (inference affine) + SiLU (sigmoid -> EUP slot).
    y = acc * scale_ref[...] + shift_ref[...]
    out = y * jax.nn.sigmoid(y)
    o_ref[...] = out.reshape(H, W, C2).astype(o_ref.dtype)


def conv2_forward(x_nchw, conv_w, cv2_w, bn_gamma, bn_beta, bn_mean, bn_var,
                  eps=1e-5):
    """Conv2.forward.

    x_nchw : (B, C1, H, W)      input (PyTorch NCHW convention)
    conv_w : (C2, C1, 3, 3)     self.conv weight (OIHW, bias=False)
    cv2_w  : (C2, C1, 1, 1)     self.cv2 weight  (OIHW, bias=False)
    bn_*   : (C2,)              BatchNorm2d gamma / beta / running_mean / running_var
    returns (B, C2, H, W)
    """
    B, C1, H, W = x_nchw.shape
    C2 = conv_w.shape[0]

    # NCHW -> NHWC and zero-pad H/W by 1 ("same" padding for k=3, s=1).
    # One fused XLA pass; removes the need for any in-kernel scratch / zeroing.
    x = jnp.transpose(x_nchw, (0, 2, 3, 1)).astype(jnp.float32)
    xp = jnp.pad(x, ((0, 0), (1, 1), (1, 1), (0, 0)))

    # OIHW -> per-tap (C1, C2) matrices (tap index = kh*3 + kw).
    w3_taps = jnp.transpose(conv_w.astype(jnp.float32), (2, 3, 1, 0)).reshape(9, C1, C2)
    w1_mat = jnp.transpose(cv2_w[:, :, 0, 0]).astype(jnp.float32)        # (C1, C2)

    # Fold inference BatchNorm into a per-channel scale + shift (hoisted out of
    # the kernel's hot loop).
    scale = (bn_gamma.astype(jnp.float32) /
             jnp.sqrt(bn_var.astype(jnp.float32) + eps))
    shift = bn_beta.astype(jnp.float32) - bn_mean.astype(jnp.float32) * scale
    scale = scale.reshape(1, C2)
    shift = shift.reshape(1, C2)

    out = pl.pallas_call(
        _conv2_kernel,
        out_shape=jax.ShapeDtypeStruct((B, H, W, C2), jnp.float32),
        grid=(B,),
        in_specs=[
            pl.BlockSpec((pl.Squeezed(), H + 2, W + 2, C1), lambda b: (b, 0, 0, 0)),
            pl.BlockSpec((9, C1, C2), lambda b: (0, 0, 0)),   # stays VMEM-resident
            pl.BlockSpec((C1, C2), lambda b: (0, 0)),
            pl.BlockSpec((1, C2), lambda b: (0, 0)),
            pl.BlockSpec((1, C2), lambda b: (0, 0)),
        ],
        out_specs=pl.BlockSpec((pl.Squeezed(), H, W, C2), lambda b: (b, 0, 0, 0)),
        compiler_params=pltpu.CompilerParams(
            dimension_semantics=("parallel",),   # batch elems independent (v7x: 2 TCs)
            vmem_limit_bytes=48 * 1024 * 1024,
        ),
    )(xp, w3_taps, w1_mat, scale, shift)

    return jnp.transpose(out, (0, 3, 1, 2))                  # back to NCHW


def conv2_reference(x, conv_w, cv2_w, gamma, beta, mean, var, eps=1e-5):
    """Pure-JAX reference matching the PyTorch module (NCHW, eval-mode BN)."""
    dn = ("NCHW", "OIHW", "NCHW")
    y = jax.lax.conv_general_dilated(
        x, conv_w, window_strides=(1, 1), padding=((1, 1), (1, 1)),
        dimension_numbers=dn, precision=jax.lax.Precision.HIGHEST)
    y = y + jax.lax.conv_general_dilated(
        x, cv2_w, window_strides=(1, 1), padding=((0, 0), (0, 0)),
        dimension_numbers=dn, precision=jax.lax.Precision.HIGHEST)
    y = ((y - mean[None, :, None, None]) /
         jnp.sqrt(var[None, :, None, None] + eps) *
         gamma[None, :, None, None] + beta[None, :, None, None])
    return y * jax.nn.sigmoid(y)


if __name__ == "__main__":
    B, C1, C2, H, W = 2, 16, 32, 16, 16
    key = jax.random.PRNGKey(0)
    kx, k3, k1, kg, kb, km, kv = jax.random.split(key, 7)

    x = jax.random.normal(kx, (B, C1, H, W), dtype=jnp.float32)
    conv_w = jax.random.normal(k3, (C2, C1, 3, 3), dtype=jnp.float32) * 0.1
    cv2_w = jax.random.normal(k1, (C2, C1, 1, 1), dtype=jnp.float32) * 0.1
    gamma = 1.0 + 0.1 * jax.random.normal(kg, (C2,), dtype=jnp.float32)
    beta = 0.1 * jax.random.normal(kb, (C2,), dtype=jnp.float32)
    mean = 0.1 * jax.random.normal(km, (C2,), dtype=jnp.float32)
    var = jax.random.uniform(kv, (C2,), dtype=jnp.float32, minval=0.5, maxval=1.5)

    out = conv2_forward(x, conv_w, cv2_w, gamma, beta, mean, var)
    out = jax.block_until_ready(out)

    ref = conv2_reference(x, conv_w, cv2_w, gamma, beta, mean, var)
    # Tolerance leaves headroom for MXU f32-pass rounding vs XLA's HIGHEST-precision
    # conv algorithm; typical max abs error observed is far below this.
    if not jnp.allclose(out, ref, atol=2e-2, rtol=2e-2):
        max_err = float(jnp.max(jnp.abs(out - ref)))
        raise AssertionError(f"Pallas Conv2 mismatch vs reference, max abs err = {max_err}")

    print("KERNEL_OK")
</pallas_src>

<mosaic_0001>
module attributes {stable_mosaic.version = 11 : i64} {
  func.func @_conv2_kernel(%arg0: i32, %arg1: memref<1x18x18x16xf32, #tpu.memory_space<vmem>>, %arg2: memref<9x16x32xf32, #tpu.memory_space<vmem>>, %arg3: memref<16x32xf32, #tpu.memory_space<vmem>>, %arg4: memref<1x32xf32, #tpu.memory_space<vmem>>, %arg5: memref<1x32xf32, #tpu.memory_space<vmem>>, %arg6: memref<1x16x16x32xf32, #tpu.memory_space<vmem>>) attributes {dimension_semantics = [#tpu.dimension_semantics<parallel>], iteration_bounds = array<i64: 2>, scalar_prefetch = 0 : i64, scratch_operands = 0 : i64, tpu.core_type = #tpu.core_type<tc>, window_params = [{transform_indices = @transform_0, window_bounds = array<i64: 1, 18, 18, 16>}, {pipeline_mode = #tpu.pipeline_mode<synchronous>, transform_indices = @transform_1, window_bounds = array<i64: 9, 16, 32>}, {pipeline_mode = #tpu.pipeline_mode<synchronous>, transform_indices = @transform_2, window_bounds = array<i64: 16, 32>}, {pipeline_mode = #tpu.pipeline_mode<synchronous>, transform_indices = @transform_3, window_bounds = array<i64: 1, 32>}, {pipeline_mode = #tpu.pipeline_mode<synchronous>, transform_indices = @transform_4, window_bounds = array<i64: 1, 32>}, {transform_indices = @transform_5, window_bounds = array<i64: 1, 16, 16, 32>}]} {
    %c0 = arith.constant 0 : index
    %c0_0 = arith.constant 0 : index
    %c0_1 = arith.constant 0 : index
    %c0_2 = arith.constant 0 : index
    %0 = vector.load %arg1[%c0, %c0_0, %c0_1, %c0_2] : memref<1x18x18x16xf32, #tpu.memory_space<vmem>>, vector<1x18x18x16xf32>
    %1 = vector.shape_cast %0 : vector<1x18x18x16xf32> to vector<18x18x16xf32>
    %cst = arith.constant 0.000000e+00 : f32
    %2 = vector.broadcast %cst : f32 to vector<256x32xf32>
    %3 = vector.extract_strided_slice %1 {offsets = [0, 0, 0], sizes = [16, 16, 16], strides = [1, 1, 1]} : vector<18x18x16xf32> to vector<16x16x16xf32>
    %4 = vector.shape_cast %3 : vector<16x16x16xf32> to vector<256x16xf32>
    %c0_3 = arith.constant 0 : index
    %c0_4 = arith.constant 0 : index
    %c0_5 = arith.constant 0 : index
    %5 = vector.load %arg2[%c0_3, %c0_4, %c0_5] : memref<9x16x32xf32, #tpu.memory_space<vmem>>, vector<1x16x32xf32>
    %6 = vector.shape_cast %5 : vector<1x16x32xf32> to vector<16x32xf32>
    %cst_6 = arith.constant dense<0.000000e+00> : vector<256x32xf32>
    %7 = tpu.matmul %4, %6, %cst_6 {dimension_numbers = #tpu.dot_dimension_numbers<[1], [0], [0], [1], [0, 0, 1, 1], [], []>} : vector<256x16xf32>, vector<16x32xf32>, vector<256x32xf32> -> vector<256x32xf32>
    %8 = arith.addf %2, %7 : vector<256x32xf32>
    %9 = vector.extract_strided_slice %1 {offsets = [0, 1, 0], sizes = [16, 16, 16], strides = [1, 1, 1]} : vector<18x18x16xf32> to vector<16x16x16xf32>
    %10 = vector.shape_cast %9 : vector<16x16x16xf32> to vector<256x16xf32>
    %c1 = arith.constant 1 : index
    %c0_7 = arith.constant 0 : index
    %c0_8 = arith.constant 0 : index
    %11 = vector.load %arg2[%c1, %c0_7, %c0_8] : memref<9x16x32xf32, #tpu.memory_space<vmem>>, vector<1x16x32xf32>
    %12 = vector.shape_cast %11 : vector<1x16x32xf32> to vector<16x32xf32>
    %cst_9 = arith.constant dense<0.000000e+00> : vector<256x32xf32>
    %13 = tpu.matmul %10, %12, %cst_9 {dimension_numbers = #tpu.dot_dimension_numbers<[1], [0], [0], [1], [0, 0, 1, 1], [], []>} : vector<256x16xf32>, vector<16x32xf32>, vector<256x32xf32> -> vector<256x32xf32>
    %14 = arith.addf %8, %13 : vector<256x32xf32>
    %15 = vector.extract_strided_slice %1 {offsets = [0, 2, 0], sizes = [16, 16, 16], strides = [1, 1, 1]} : vector<18x18x16xf32> to vector<16x16x16xf32>
    %16 = vector.shape_cast %15 : vector<16x16x16xf32> to vector<256x16xf32>
    %c2 = arith.constant 2 : index
    %c0_10 = arith.constant 0 : index
    %c0_11 = arith.constant 0 : index
    %17 = vector.load %arg2[%c2, %c0_10, %c0_11] : memref<9x16x32xf32, #tpu.memory_space<vmem>>, vector<1x16x32xf32>
    %18 = vector.shape_cast %17 : vector<1x16x32xf32> to vector<16x32xf32>
    %cst_12 = arith.constant dense<0.000000e+00> : vector<256x32xf32>
    %19 = tpu.matmul %16, %18, %cst_12 {dimension_numbers = #tpu.dot_dimension_numbers<[1], [0], [0], [1], [0, 0, 1, 1], [], []>} : vector<256x16xf32>, vector<16x32xf32>, vector<256x32xf32> -> vector<256x32xf32>
    %20 = arith.addf %14, %19 : vector<256x32xf32>
    %21 = vector.extract_strided_slice %1 {offsets = [1, 0, 0], sizes = [16, 16, 16], strides = [1, 1, 1]} : vector<18x18x16xf32> to vector<16x16x16xf32>
    %22 = vector.shape_cast %21 : vector<16x16x16xf32> to vector<256x16xf32>
    %c3 = arith.constant 3 : index
    %c0_13 = arith.constant 0 : index
    %c0_14 = arith.constant 0 : index
    %23 = vector.load %arg2[%c3, %c0_13, %c0_14] : memref<9x16x32xf32, #tpu.memory_space<vmem>>, vector<1x16x32xf32>
    %24 = vector.shape_cast %23 : vector<1x16x32xf32> to vector<16x32xf32>
    %cst_15 = arith.constant dense<0.000000e+00> : vector<256x32xf32>
    %25 = tpu.matmul %22, %24, %cst_15 {dimension_numbers = #tpu.dot_dimension_numbers<[1], [0], [0], [1], [0, 0, 1, 1], [], []>} : vector<256x16xf32>, vector<16x32xf32>, vector<256x32xf32> -> vector<256x32xf32>
    %26 = arith.addf %20, %25 : vector<256x32xf32>
    %27 = vector.extract_strided_slice %1 {offsets = [1, 1, 0], sizes = [16, 16, 16], strides = [1, 1, 1]} : vector<18x18x16xf32> to vector<16x16x16xf32>
    %28 = vector.shape_cast %27 : vector<16x16x16xf32> to vector<256x16xf32>
    %c4 = arith.constant 4 : index
    %c0_16 = arith.constant 0 : index
    %c0_17 = arith.constant 0 : index
    %29 = vector.load %arg2[%c4, %c0_16, %c0_17] : memref<9x16x32xf32, #tpu.memory_space<vmem>>, vector<1x16x32xf32>
    %30 = vector.shape_cast %29 : vector<1x16x32xf32> to vector<16x32xf32>
    %cst_18 = arith.constant dense<0.000000e+00> : vector<256x32xf32>
    %31 = tpu.matmul %28, %30, %cst_18 {dimension_numbers = #tpu.dot_dimension_numbers<[1], [0], [0], [1], [0, 0, 1, 1], [], []>} : vector<256x16xf32>, vector<16x32xf32>, vector<256x32xf32> -> vector<256x32xf32>
    %32 = arith.addf %26, %31 : vector<256x32xf32>
    %33 = vector.extract_strided_slice %1 {offsets = [1, 2, 0], sizes = [16, 16, 16], strides = [1, 1, 1]} : vector<18x18x16xf32> to vector<16x16x16xf32>
    %34 = vector.shape_cast %33 : vector<16x16x16xf32> to vector<256x16xf32>
    %c5 = arith.constant 5 : index
    %c0_19 = arith.constant 0 : index
    %c0_20 = arith.constant 0 : index
    %35 = vector.load %arg2[%c5, %c0_19, %c0_20] : memref<9x16x32xf32, #tpu.memory_space<vmem>>, vector<1x16x32xf32>
    %36 = vector.shape_cast %35 : vector<1x16x32xf32> to vector<16x32xf32>
    %cst_21 = arith.constant dense<0.000000e+00> : vector<256x32xf32>
    %37 = tpu.matmul %34, %36, %cst_21 {dimension_numbers = #tpu.dot_dimension_numbers<[1], [0], [0], [1], [0, 0, 1, 1], [], []>} : vector<256x16xf32>, vector<16x32xf32>, vector<256x32xf32> -> vector<256x32xf32>
    %38 = arith.addf %32, %37 : vector<256x32xf32>
    %39 = vector.extract_strided_slice %1 {offsets = [2, 0, 0], sizes = [16, 16, 16], strides = [1, 1, 1]} : vector<18x18x16xf32> to vector<16x16x16xf32>
    %40 = vector.shape_cast %39 : vector<16x16x16xf32> to vector<256x16xf32>
    %c6 = arith.constant 6 : index
    %c0_22 = arith.constant 0 : index
    %c0_23 = arith.constant 0 : index
    %41 = vector.load %arg2[%c6, %c0_22, %c0_23] : memref<9x16x32xf32, #tpu.memory_space<vmem>>, vector<1x16x32xf32>
    %42 = vector.shape_cast %41 : vector<1x16x32xf32> to vector<16x32xf32>
    %cst_24 = arith.constant dense<0.000000e+00> : vector<256x32xf32>
    %43 = tpu.matmul %40, %42, %cst_24 {dimension_numbers = #tpu.dot_dimension_numbers<[1], [0], [0], [1], [0, 0, 1, 1], [], []>} : vector<256x16xf32>, vector<16x32xf32>, vector<256x32xf32> -> vector<256x32xf32>
    %44 = arith.addf %38, %43 : vector<256x32xf32>
    %45 = vector.extract_strided_slice %1 {offsets = [2, 1, 0], sizes = [16, 16, 16], strides = [1, 1, 1]} : vector<18x18x16xf32> to vector<16x16x16xf32>
    %46 = vector.shape_cast %45 : vector<16x16x16xf32> to vector<256x16xf32>
    %c7 = arith.constant 7 : index
    %c0_25 = arith.constant 0 : index
    %c0_26 = arith.constant 0 : index
    %47 = vector.load %arg2[%c7, %c0_25, %c0_26] : memref<9x16x32xf32, #tpu.memory_space<vmem>>, vector<1x16x32xf32>
    %48 = vector.shape_cast %47 : vector<1x16x32xf32> to vector<16x32xf32>
    %cst_27 = arith.constant dense<0.000000e+00> : vector<256x32xf32>
    %49 = tpu.matmul %46, %48, %cst_27 {dimension_numbers = #tpu.dot_dimension_numbers<[1], [0], [0], [1], [0, 0, 1, 1], [], []>} : vector<256x16xf32>, vector<16x32xf32>, vector<256x32xf32> -> vector<256x32xf32>
    %50 = arith.addf %44, %49 : vector<256x32xf32>
    %51 = vector.extract_strided_slice %1 {offsets = [2, 2, 0], sizes = [16, 16, 16], strides = [1, 1, 1]} : vector<18x18x16xf32> to vector<16x16x16xf32>
    %52 = vector.shape_cast %51 : vector<16x16x16xf32> to vector<256x16xf32>
    %c8 = arith.constant 8 : index
    %c0_28 = arith.constant 0 : index
    %c0_29 = arith.constant 0 : index
    %53 = vector.load %arg2[%c8, %c0_28, %c0_29] : memref<9x16x32xf32, #tpu.memory_space<vmem>>, vector<1x16x32xf32>
    %54 = vector.shape_cast %53 : vector<1x16x32xf32> to vector<16x32xf32>
    %cst_30 = arith.constant dense<0.000000e+00> : vector<256x32xf32>
    %55 = tpu.matmul %52, %54, %cst_30 {dimension_numbers = #tpu.dot_dimension_numbers<[1], [0], [0], [1], [0, 0, 1, 1], [], []>} : vector<256x16xf32>, vector<16x32xf32>, vector<256x32xf32> -> vector<256x32xf32>
    %56 = arith.addf %50, %55 : vector<256x32xf32>
    %57 = vector.extract_strided_slice %1 {offsets = [1, 1, 0], sizes = [16, 16, 16], strides = [1, 1, 1]} : vector<18x18x16xf32> to vector<16x16x16xf32>
    %58 = vector.shape_cast %57 : vector<16x16x16xf32> to vector<256x16xf32>
    %c0_31 = arith.constant 0 : index
    %c0_32 = arith.constant 0 : index
    %59 = vector.load %arg3[%c0_31, %c0_32] : memref<16x32xf32, #tpu.memory_space<vmem>>, vector<16x32xf32>
    %cst_33 = arith.constant dense<0.000000e+00> : vector<256x32xf32>
    %60 = tpu.matmul %58, %59, %cst_33 {dimension_numbers = #tpu.dot_dimension_numbers<[1], [0], [0], [1], [0, 0, 1, 1], [], []>} : vector<256x16xf32>, vector<16x32xf32>, vector<256x32xf32> -> vector<256x32xf32>
    %61 = arith.addf %56, %60 : vector<256x32xf32>
    %c0_34 = arith.constant 0 : index
    %c0_35 = arith.constant 0 : index
    %62 = vector.load %arg4[%c0_34, %c0_35] : memref<1x32xf32, #tpu.memory_space<vmem>>, vector<1x32xf32>
    %63 = vector.broadcast %62 : vector<1x32xf32> to vector<256x32xf32>
    %64 = arith.mulf %61, %63 : vector<256x32xf32>
    %c0_36 = arith.constant 0 : index
    %c0_37 = arith.constant 0 : index
    %65 = vector.load %arg5[%c0_36, %c0_37] : memref<1x32xf32, #tpu.memory_space<vmem>>, vector<1x32xf32>
    %66 = vector.broadcast %65 : vector<1x32xf32> to vector<256x32xf32>
    %67 = arith.addf %64, %66 : vector<256x32xf32>
    %68 = arith.negf %67 : vector<256x32xf32>
    %69 = math.exp %68 : vector<256x32xf32>
    %cst_38 = arith.constant 1.000000e+00 : f32
    %70 = vector.broadcast %cst_38 : f32 to vector<256x32xf32>
    %71 = arith.addf %70, %69 : vector<256x32xf32>
    %72 = arith.divf %70, %71 : vector<256x32xf32>
    %73 = arith.mulf %67, %72 : vector<256x32xf32>
    %74 = vector.shape_cast %73 : vector<256x32xf32> to vector<16x16x32xf32>
    %c0_39 = arith.constant 0 : index
    %c0_40 = arith.constant 0 : index
    %c0_41 = arith.constant 0 : index
    %c0_42 = arith.constant 0 : index
    %75 = vector.load %arg6[%c0_39, %c0_40, %c0_41, %c0_42] : memref<1x16x16x32xf32, #tpu.memory_space<vmem>>, vector<1x16x16x32xf32>
    %76 = vector.shape_cast %75 : vector<1x16x16x32xf32> to vector<16x16x32xf32>
    %77 = vector.shape_cast %74 : vector<16x16x32xf32> to vector<1x16x16x32xf32>
    tpu.vector_store %arg6[%c0_39, %c0_40, %c0_41, %c0_42], %77 {strides = array<i32>} : memref<1x16x16x32xf32, #tpu.memory_space<vmem>>, vector<1x16x16x32xf32>,
    return
  }
  func.func @transform_0(%arg0: i32) -> (i32, i32, i32, i32) {
    %c0_i32 = arith.constant 0 : i32
    %c0_i32_0 = arith.constant 0 : i32
    %c0_i32_1 = arith.constant 0 : i32
    %c0_i32_2 = arith.constant 0 : i32
    return %arg0, %c0_i32, %c0_i32_0, %c0_i32_1 : i32, i32, i32, i32
  }
  func.func @transform_1(%arg0: i32) -> (i32, i32, i32) {
    %c0_i32 = arith.constant 0 : i32
    %c0_i32_0 = arith.constant 0 : i32
    %c0_i32_1 = arith.constant 0 : i32
    %c0_i32_2 = arith.constant 0 : i32
    return %c0_i32, %c0_i32_0, %c0_i32_1 : i32, i32, i32
  }
  func.func @transform_2(%arg0: i32) -> (i32, i32) {
    %c0_i32 = arith.constant 0 : i32
    %c0_i32_0 = arith.constant 0 : i32
    %c0_i32_1 = arith.constant 0 : i32
    return %c0_i32, %c0_i32_0 : i32, i32
  }
  func.func @transform_3(%arg0: i32) -> (i32, i32) {
    %c0_i32 = arith.constant 0 : i32
    %c0_i32_0 = arith.constant 0 : i32
    %c0_i32_1 = arith.constant 0 : i32
    return %c0_i32, %c0_i32_0 : i32, i32
  }
  func.func @transform_4(%arg0: i32) -> (i32, i32) {
    %c0_i32 = arith.constant 0 : i32
    %c0_i32_0 = arith.constant 0 : i32
    %c0_i32_1 = arith.constant 0 : i32
    return %c0_i32, %c0_i32_0 : i32, i32
  }
  func.func @transform_5(%arg0: i32) -> (i32, i32, i32, i32) {
    %c0_i32 = arith.constant 0 : i32
    %c0_i32_0 = arith.constant 0 : i32
    %c0_i32_1 = arith.constant 0 : i32
    %c0_i32_2 = arith.constant 0 : i32
    return %arg0, %c0_i32, %c0_i32_0, %c0_i32_1 : i32, i32, i32, i32
  }
}

</mosaic_0001>

<bundles_post_ra>
// kernel: tpu_custom_call.1
= control target key start
LH: loop header
LB: loop body
LE: loop exit
PB: predicated region body
PF: predicated region fallthrough
CT: control target
= control target key end

     0   :  { %10 = vsyncpa [#allocation3], 0  ;;  %s7026_s0 = inlined_call_operand.vmem [shape: f32[2,18,18,16], index: 0, kind: input, shape index: {}]   ;;  %s7027_s1 = inlined_call_operand.vmem [shape: f32[9,16,32], index: 1, kind: input, shape index: {}]   ;;  %s7028_s2 = inlined_call_operand.vmem [shape: f32[16,32], index: 2, kind: input, shape index: {}]   ;;  %s7029_s3 = inlined_call_operand.vmem [shape: f32[1,32], index: 3, kind: input, shape index: {}]   ;;  %s7030_s4 = inlined_call_operand.vmem [shape: f32[1,32], index: 4, kind: input, shape index: {}]   ;;  %s7031_s5 = inlined_call_operand.hbm [shape: f32[2,16,16,32], index: 5, kind: output, shape index: {}]  }
   0x1   :  { %12 = vsyncpa [#allocation3 + $0x1], 0  ;;  %s5512_s18 = smov 0   ;;  %s5514_s19 = smov 0  }
   0x2   :  { %s5516_s20 = smov 0   ;;  %s5518_s21 = smov 0  }
   0x3 LB: > { %s5533_s22 = sadd.s32 4294967295, %s5477_s21   ;;  %s3675_s23 = sadd.s32 4294967294, %s5477_s21   ;;  %s5477_s21 = sphi %s5518_s21, %s7313_s21   ;;  %s5473_s20 = sphi %s5516_s20, %s7312_s20   ;;  %s5469_s19 = sphi %s5514_s19, %s7311_s19   ;;  %s5465_s18 = sphi %s5512_s18, %s7310_s18  }
   0x4   : > { %s5537_s24 = sadd.s32 1, %s5477_s21   ;;  %s135_s25 = sadd.s32 1, %s5473_s20 }
   0x5   : > { %s132_s26 = ssub.s32 %s5477_s21, %s5537_s24  ;;  %p145_p0 = scmp.ne.s32.totalorder %s5473_s20, %s5469_s19 }
   0x6   : > { %p133_p1 = scmp.eq.s32.totalorder %s132_s26, 0  ;;  %p146_p2 = scmp.eq.s32.totalorder %s5533_s22, 1 }
   0x7   : > { %p151_p3 = scmp.ne.s32.totalorder %s5469_s19, %s5465_s18  ;;  %p152_p4 = scmp.eq.s32.totalorder %s3675_s23, 1 }
   0x8   : > { %s5548_s27 = scalar_select %p133_p1, %s5473_s20, %s135_s25  }
   0x9   : > { %p5550_p5 = por %p146_p2, %p145_p0  ;;  %p5554_p6 = por %p152_p4, %p151_p3 }
   0xa   : > { %p3678_p7 = scmp.ge.s32.totalorder %s5477_s21, 1  ;;  %p190_p8 = scmp.lt.s32.totalorder %s5477_s21, 3 }
   0xc   : > { %p191_p9 = pnand %p3678_p7, %p190_p8 }
   0xe   : > { %194 = sbr.rel (%p191_p9) target bundleno = 616 (0x268), region = 40 }
  0x15   : > { %v3681_v0 = vld [vmem:[%s7027_s1 + $0x10] sm:$0xff]  ;;  %v3682_v1 = vld [vmem:[%s7027_s1 + $0x18] sm:$0xff]  ;;  %p218_p10 = scmp.lt.s32.totalorder %s5533_s22, 1  ;;  %v277_v5 = vld [vmem:[%s7027_s1] sm:$0xff]  ;;  %vm327_vm0 = vcmask 1046528   ;;  %vm411_vm1 = vcmask 130048  }
  0x16   : > { %v3849_v2 = vld [vmem:[%s7027_s1 + $0x50] sm:$0xff]  ;;  %v4917_v3 = vpack.c.bf16 %v3682_v1, %v3681_v0  ;;  %v3850_v4 = vld [vmem:[%s7027_s1 + $0x58] sm:$0xff]  ;;  %v278_v6 = vld [vmem:[%s7027_s1 + $0x8] sm:$0xff]  ;;  %vm990_vm2 = vcmask 1045504   ;;  %vm3566_vm3 = vcmask 261120   ;;  %s4056_s9 = sshll.u32 %s5533_s22, 12 }
  0x17   : > { %v4937_v7 = vpack.c.bf16 %v3850_v4, %v3849_v2  ;;  %s219_s17 = scalar_select %p218_p10, %s5533_s22, 1  ;;  %v4921_v8 = vpack.c.bf16 %v278_v6, %v277_v5  ;;  %v3883_v9 = vld [vmem:[%s7027_s1 + $0x60] sm:$0xff]  ;;  %v3884_v10 = vld [vmem:[%s7027_s1 + $0x68] sm:$0xff]  ;;  %v3917_v14 = vld [vmem:[%s7027_s1 + $0x70] sm:$0xff] }
  0x18   : > { %4918 = vmatprep.subr.bf16.mxu1 %v4917_v3  ;;  %v4941_v11 = vpack.c.bf16 %v3884_v10, %v3883_v9  ;;  %v3747_v12 = vld [vmem:[%s7027_s1 + $0x20] sm:$0xff]  ;;  %v3748_v13 = vld [vmem:[%s7027_s1 + $0x28] sm:$0xff]  ;;  %v3918_v15 = vld [vmem:[%s7027_s1 + $0x78] sm:$0xff]  ;;  %s5479_s15 = smov [#allocation2]  }
  0x19   : > { %4938 = vmatprep.subr.bf16.mxu0 %v4937_v7  ;;  %4920 = vmatpush3.bf16.msra.mxu1 %v4917_v3  ;;  %s5245_s6 = smul.u32 432, %s219_s17  ;;  %v5621_v24 = vpack.c.bf16 %v3748_v13, %v3747_v12  ;;  %v5627_v29 = vpack.c.bf16 %v3918_v15, %v3917_v14  ;;  %s5419_s16 = sshll.u32 %s5479_s15, 4  ;;  %s5420_s16 = int_to_ptr.vmem [resolvable:$false] %s5419_s16 }
  0x1a   : > { %4940 = vmatpush3.bf16.msra.mxu0 %v4937_v7  ;;  %4922 = vmatprep.subr.bf16.mxu1 %v4921_v8  ;;  %s5421_s17 = scalar_lea.vmem %s5420_s16, 8192 }
  0x1b   : > { %s5595_s13 = scalar_lea.vmem %s7026_s0, %s5245_s6  ;;  %4942 = vmatprep.subr.bf16.mxu0 %v4941_v11  ;;  %s215_s6 = sand.u32 1, %s5469_s19  }
  0x1c   : > { %v5604_v16 = vld [vmem:[%s5595_s13] sm:$0xff]  ;;  %v5607_v17 = vld [vmem:[%s5595_s13 + $0x8] sm:$0xff]  ;;  %v5610_v18 = vld [vmem:[%s5595_s13 + $0x18] sm:$0xff]  ;;  %s6775_s7 = sshll.u32 %s215_s6, 8  ;;  %s6985_s22 = scalar_lea.sflag [#allocation3], %s215_s6 }
  0x1d   : > { %v328_v19 = vrot.slane %v5604_v16, 1  ;;  %v329_v20 = vrot.slane %v5607_v17, 1  ;;  %v5615_v21 = vld [vmem:[%s5595_s13 + $0x20] sm:$0xff]  ;;  %v996_v22 = vrot.slane %v5610_v18, 2  ;;  %v5619_v23 = vld [vmem:[%s5595_s13 + $0x10] sm:$0x3] }
  0x1e   : > { %v997_v25 = vrot.slane %v5615_v21, 2  ;;  %v331_v26 = vrot.slane %v5619_v23, 1  ;;  %v228_v27 = vld [vmem:[%s5595_s13 + $0x28] sm:$0x3]  ;;  %v333_v28 = vrot.slane %v5610_v18, 1  ;;  %v334_v32 = vrot.slane %v5615_v21, 1 }
  0x1f   : > { %v330_v30 = vsel %vm327_vm0, %v328_v19, %v329_v20  ;;  %v999_v31 = vrot.slane %v228_v27, 2  ;;  %v5632_v33 = vld [vmem:[%s5595_s13 + $0x30] sm:$0xff]  ;;  %v5635_v34 = vld [vmem:[%s5595_s13 + $0x38] sm:$0xff]  ;;  %v336_v35 = vrot.slane %v228_v27, 1  ;;  %v5638_v36 = vld [vmem:[%s5595_s13 + $0x48] sm:$0xff]  ;;  %s6796_s8 = scalar_lea.vmem [#allocation2], %s6775_s7 }
  0x20   : > { %4401 = vmatprep.mubr.msk.f32.mxu1 %vm411_vm1, %v330_v30  ;;  %v5642_v37 = vsel %vm990_vm2, %v996_v22, %v997_v25  ;;  %v332_v38 = vsel %vm327_vm0, %v329_v20, %v331_v26  ;;  %v1001_v39 = vrot.slane %v5632_v33, 2  ;;  %v1002_v40 = vrot.slane %v5635_v34, 2  ;;  %v231_v41 = vld [vmem:[%s5595_s13 + $0x40] sm:$0x3]  ;;  %v5649_v42 = vld [vmem:[%s5595_s13 + $0x50] sm:$0xff]  ;;  %v5676_v53 = vld [vmem:[%s5595_s13 + $0x68] sm:$0xff] }
  0x21   : > { %4661 = vmatprep.mubr.msk.f32.mxu0 %vm411_vm1, %v5642_v37  ;;  %4402 = vmatmul.mubr.msk.f32.vlgmr.msra.gmra.mrb[0].mxu1 %vm411_vm1, %v332_v38  ;;  %v5655_v43 = vsel %vm990_vm2, %v997_v25, %v999_v31  ;;  %v5658_v44 = vsel %vm327_vm0, %v333_v28, %v334_v32  ;;  %v5661_v45 = vsel %vm327_vm0, %v334_v32, %v336_v35  ;;  %v1004_v46 = vrot.slane %v231_v41, 2  ;;  %v234_v47 = vld [vmem:[%s5595_s13 + $0x58] sm:$0x3]  ;;  %v5665_v48 = vld [vmem:[%s5595_s13 + $0x60] sm:$0xff]  ;;  %v237_v58 = vld [vmem:[%s5595_s13 + $0x70] sm:$0x3] }
  0x22   : > { %7156 = vst [vmem:[#allocation5_spill] sm:$0xff] %v5658_v44  ;;  %7157 = vst [vmem:[#allocation6_spill] sm:$0xff] %v5661_v45  ;;  %4924 = vmatpush3.bf16.msra.mxu1 %v4921_v8  ;;  %4662 = vmatmul.mubr.msk.f32.vlgmr.msra.gmra.mrb[0].mxu0 %vm411_vm1, %v5655_v43  ;;  %v5670_v49 = vsel %vm990_vm2, %v1001_v39, %v1002_v40  ;;  %v338_v50 = vrot.slane %v5632_v33, 1  ;;  %v339_v51 = vrot.slane %v5635_v34, 1  ;;  %v1006_v52 = vrot.slane %v5638_v36, 2  ;;  %v5701_v1 = vld [vmem:[%s5595_s13 + $0x78] sm:$0xff] }
  0x23   : > { %4944 = vmatpush3.bf16.msra.mxu0 %v4941_v11  ;;  %4404 = vmatprep.mubr.msk.f32.mxu1 %vm411_vm1, %v5658_v44  ;;  %v5681_v54 = vsel %vm990_vm2, %v1002_v40, %v1004_v46  ;;  %v1007_v55 = vrot.slane %v5649_v42, 2  ;;  %v341_v56 = vrot.slane %v231_v41, 1  ;;  %v1009_v57 = vrot.slane %v234_v47, 2  ;;  %v5704_v2 = vld [vmem:[%s5595_s13 + $0x80] sm:$0xff]  ;;  %v240_v13 = vld [vmem:[%s5595_s13 + $0x88] sm:$0x3] }
  0x24   : > { %7158 = vst [vmem:[#allocation7_spill] sm:$0xff] %v5681_v54  ;;  %4664 = vmatprep.mubr.msk.f32.mxu0 %vm411_vm1, %v5670_v49  ;;  %v5688_v59 = vsel %vm327_vm0, %v338_v50, %v339_v51  ;;  %v343_v60 = vrot.slane %v5638_v36, 1  ;;  %v344_v61 = vrot.slane %v5649_v42, 1  ;;  %v1011_v62 = vrot.slane %v5665_v48, 2  ;;  %4926 = vmatprep.subr.bf16.mxu1 %v5621_v24  ;;  %v5733_v14 = vld [vmem:[%s5595_s13 + $0x90] sm:$0xff]  ;;  %v5736_v15 = vld [vmem:[%s5595_s13 + $0x98] sm:$0xff] }
  0x25   : > { %7159 = vst [vmem:[#allocation8_spill] sm:$0xff] %v5688_v59  ;;  %4405 = vmatmul.mubr.msk.f32.gmra.mrb[2].mxu1 %vm411_vm1, %v5661_v45  ;;  %v5697_v63 = vsel %vm990_vm2, %v1006_v52, %v1007_v55  ;;  %v1012_v0 = vrot.slane %v5676_v53, 2  ;;  %4946 = vmatprep.subr.bf16.mxu0 %v5627_v29  ;;  %v5712_v3 = vsel %vm327_vm0, %v339_v51, %v341_v56  ;;  %v346_v4 = vrot.slane %v234_v47, 1  ;;  %v243_v30 = vld [vmem:[%s5595_s13 + $0xa0] sm:$0x3]  ;;  %v5764_v38 = vld [vmem:[%s5595_s13 + $0xa8] sm:$0xff] }
  0x26   : > { %7160 = vst [vmem:[#allocation9_spill] sm:$0xff] %v5697_v63  ;;  %4665 = vmatmul.mubr.msk.f32.gmra.mrb[2].mxu0 %vm411_vm1, %v5681_v54  ;;  %4407 = vmatprep.mubr.msk.f32.mxu1 %vm411_vm1, %v5688_v59  ;;  %7161 = vst [vmem:[#allocation10_spill] sm:$0xff] %v5712_v3  ;;  %v1014_v5 = vrot.slane %v237_v58, 2  ;;  %v5717_v6 = vsel %vm990_vm2, %v1007_v55, %v1009_v57  ;;  %v5720_v7 = vsel %vm327_vm0, %v343_v60, %v344_v61  ;;  %v5767_v39 = vld [vmem:[%s5595_s13 + $0xb0] sm:$0xff]  ;;  %v5795_v60 = vld [vmem:[%s5595_s13 + $0xc0] sm:$0xff]  ;;  %s3613_s10 = sshll.u32 %s6796_s8, 4  ;;  %s6978_s10 = int_to_ptr.vmem [resolvable:$true] %s3613_s10 }
  0x27   : > { %4667 = vmatprep.mubr.msk.f32.mxu0 %vm411_vm1, %v5697_v63  ;;  %7162 = vst [vmem:[#allocation11_spill] sm:$0xff] %v5717_v6  ;;  %7163 = vst [vmem:[#allocation12_spill] sm:$0xff] %v5720_v7  ;;  %v348_v8 = vrot.slane %v5665_v48, 1  ;;  %v349_v9 = vrot.slane %v5676_v53, 1  ;;  %v5725_v10 = vsel %vm990_vm2, %v1011_v62, %v1012_v0  ;;  %v1016_v11 = vrot.slane %v5701_v1, 2  ;;  %s5415_s14 = scalar_lea.vmem %s6978_s10, 4096  ;;  %p5422_p0 = scmp.lt.s32.totalorder %s6978_s10, %s5420_s16 }
  0x28   : > { %7164 = vst [vmem:[#allocation13_spill] sm:$0xff] %v5725_v10  ;;  %v1017_v12 = vrot.slane %v5704_v2, 2  ;;  %v5743_v19 = vsel %vm327_vm0, %v344_v61, %v346_v4  ;;  %v5746_v20 = vsel %vm990_vm2, %v1012_v0, %v1014_v5  ;;  %v351_v22 = vrot.slane %v237_v58, 1  ;;  %v246_v58 = vld [vmem:[%s5595_s13 + $0xb8] sm:$0x3]  ;;  %v5798_v61 = vld [vmem:[%s5595_s13 + $0xc8] sm:$0xff]  ;;  %p5416_p11 = scmp.ne.s32.totalorder %s6978_s10, %s5415_s14  ;;  %p5423_p1 = scmp.lt.s32.totalorder %s5421_s17, %s5415_s14 }
  0x29   : > { %4408 = vmatmul.mubr.msk.f32.gmra.mrb[4].mxu1 %vm411_vm1, %v5712_v3  ;;  %7165 = vst [vmem:[#allocation14_spill] sm:$0xff] %v5743_v19  ;;  %7166 = vst [vmem:[#allocation15_spill] sm:$0xff] %v5746_v20  ;;  %v5751_v25 = vsel %vm327_vm0, %v348_v8, %v349_v9  ;;  %v1019_v26 = vrot.slane %v240_v13, 2  ;;  %v353_v27 = vrot.slane %v5701_v1, 1  ;;  %v354_v28 = vrot.slane %v5704_v2, 1 }
  0x2a   : > { %4668 = vmatmul.mubr.msk.f32.gmra.mrb[4].mxu0 %vm411_vm1, %v5717_v6  ;;  %4410 = vmatprep.mubr.msk.f32.mxu1 %vm411_vm1, %v5720_v7  ;;  %7167 = vst [vmem:[#allocation16_spill] sm:$0xff] %v5751_v25  ;;  %v5757_v31 = vsel %vm990_vm2, %v1016_v11, %v1017_v12  ;;  %v1021_v32 = vrot.slane %v5733_v14, 2  ;;  %v1022_v35 = vrot.slane %v5736_v15, 2  ;;  %v5774_v40 = vsel %vm327_vm0, %v349_v9, %v351_v22  ;;  %p5417_p12 = pnand %p5416_p11, %p5550_p5  ;;  %p5424_p2 = por %p5423_p1, %p5422_p0 }
  0x2b   : > { %4670 = vmatprep.mubr.msk.f32.mxu0 %vm411_vm1, %v5725_v10  ;;  %7168 = vst [vmem:[#allocation17_spill] sm:$0xff] %v5757_v31  ;;  %7169 = vst [vmem:[#allocation18_spill] sm:$0xff] %v5774_v40  ;;  %v356_v41 = vrot.slane %v240_v13, 1  ;;  %v1024_v46 = vrot.slane %v243_v30, 2  ;;  %v5779_v47 = vsel %vm990_vm2, %v1017_v12, %v1019_v26  ;;  %v5782_v50 = vsel %vm327_vm0, %v353_v27, %v354_v28  ;;  %v249_v12 = vld [vmem:[%s5595_s13 + $0xd0] sm:$0x3] }
  0x2c   : > { %7170 = vst [vmem:[#allocation19_spill] sm:$0xff] %v5779_v47  ;;  %7171 = vst [vmem:[#allocation20_spill] sm:$0xff] %v5782_v50  ;;  %v358_v51 = vrot.slane %v5733_v14, 1  ;;  %v359_v52 = vrot.slane %v5736_v15, 1  ;;  %v5787_v55 = vsel %vm990_vm2, %v1021_v32, %v1022_v35  ;;  %v1026_v56 = vrot.slane %v5764_v38, 2  ;;  %v5826_v27 = vld [vmem:[%s5595_s13 + $0xd8] sm:$0xff]  ;;  %p5418_p13 = pneg %p5417_p12 }
  0x2d   : > { %4411 = vmatmul.mubr.msk.f32.gmra.mrb[6].mxu1 %vm411_vm1, %v5743_v19  ;;  %7172 = vst [vmem:[#allocation21_spill] sm:$0xff] %v5787_v55  ;;  %v1027_v57 = vrot.slane %v5767_v39, 2  ;;  %v5805_v62 = vsel %vm327_vm0, %v354_v28, %v356_v41  ;;  %v5808_v0 = vsel %vm990_vm2, %v1022_v35, %v1024_v46  ;;  %v361_v4 = vrot.slane %v243_v30, 1  ;;  %v5829_v28 = vld [vmem:[%s5595_s13 + $0xe0] sm:$0xff] }
  0x2e   : > { %4671 = vmatmul.mubr.msk.f32.gmra.mrb[6].mxu0 %vm411_vm1, %v5746_v20  ;;  %4413 = vmatprep.mubr.msk.f32.mxu1 %vm411_vm1, %v5751_v25  ;;  %7173 = vst [vmem:[#allocation22_spill] sm:$0xff] %v5805_v62  ;;  %7174 = vst [vmem:[#allocation23_spill] sm:$0xff] %v5808_v0  ;;  %v5813_v5 = vsel %vm327_vm0, %v358_v51, %v359_v52  ;;  %v1029_v8 = vrot.slane %v246_v58, 2  ;;  %v363_v9 = vrot.slane %v5764_v38, 1  ;;  %v364_v11 = vrot.slane %v5767_v39, 1  ;;  %p5425_p3 = pnand %p5424_p2, %p5418_p13 }
  0x2f   : > { %4673 = vmatprep.mubr.msk.f32.mxu0 %vm411_vm1, %v5757_v31  ;;  %7175 = vst [vmem:[#allocation24_spill] sm:$0xff] %v5813_v5  ;;  %v5819_v13 = vsel %vm990_vm2, %v1026_v56, %v1027_v57  ;;  %v1031_v22 = vrot.slane %v5795_v60, 2  ;;  %v1032_v26 = vrot.slane %v5798_v61, 2  ;;  %v5836_v30 = vsel %vm327_vm0, %v359_v52, %v361_v4  ;;  %v252_v4 = vld [vmem:[%s5595_s13 + $0xe8] sm:$0x3] }
  0x30   : > { %7176 = vst [vmem:[#allocation25_spill] sm:$0xff] %v5819_v13  ;;  %7177 = vst [vmem:[#allocation26_spill] sm:$0xff] %v5836_v30  ;;  %v366_v32 = vrot.slane %v246_v58, 1  ;;  %v1034_v35 = vrot.slane %v249_v12, 2  ;;  %v5841_v41 = vsel %vm990_vm2, %v1027_v57, %v1029_v8  ;;  %v5844_v46 = vsel %vm327_vm0, %v363_v9, %v364_v11  ;;  %v5857_v57 = vld [vmem:[%s5595_s13 + $0xf0] sm:$0xff]  ;;  %v5860_v8 = vld [vmem:[%s5595_s13 + $0xf8] sm:$0xff] }
  0x31   : > { %4414 = vmatmul.mubr.msk.f32.gmra.mrb[8].mxu1 %vm411_vm1, %v5774_v40  ;;  %7178 = vst [vmem:[#allocation27_spill] sm:$0xff] %v5841_v41  ;;  %7179 = vst [vmem:[#allocation28_spill] sm:$0xff] %v5844_v46  ;;  %v368_v51 = vrot.slane %v5795_v60, 1  ;;  %v369_v56 = vrot.slane %v5798_v61, 1  ;;  %v5849_v45 = vsel %vm990_vm2, %v1031_v22, %v1032_v26  ;;  %v1036_v52 = vrot.slane %v5826_v27, 2 }
  0x32   : > { %4674 = vmatmul.mubr.msk.f32.gmra.mrb[8].mxu0 %vm411_vm1, %v5779_v47  ;;  %4416 = vmatprep.mubr.msk.f32.mxu1 %vm411_vm1, %v5782_v50  ;;  %7180 = vst [vmem:[#allocation29_spill] sm:$0xff] %v5849_v45  ;;  %v1037_v58 = vrot.slane %v5829_v28, 2  ;;  %v5867_v9 = vsel %vm327_vm0, %v364_v11, %v366_v32  ;;  %v5870_v22 = vsel %vm990_vm2, %v1032_v26, %v1034_v35  ;;  %v371_v44 = vrot.slane %v249_v12, 1  ;;  %v255_v47 = vld [vmem:[%s5595_s13 + $0x100] sm:$0x3]  ;;  %v5888_v12 = vld [vmem:[%s5595_s13 + $0x108] sm:$0xff] }
  0x33   : > { %4676 = vmatprep.mubr.msk.f32.mxu0 %vm411_vm1, %v5787_v55  ;;  %7181 = vst [vmem:[#allocation30_spill] sm:$0xff] %v5867_v9  ;;  %7182 = vst [vmem:[#allocation31_spill] sm:$0xff] %v5870_v22  ;;  %v374_v55 = vrot.slane %v5829_v28, 1  ;;  %v1041_v11 = vrot.slane %v5857_v57, 2  ;;  %v1042_v26 = vrot.slane %v5860_v8, 2  ;;  %v5891_v32 = vld [vmem:[%s5595_s13 + $0x110] sm:$0xff] }
  0x34   : > { %v5898_v35 = vsel %vm327_vm0, %v369_v56, %v371_v44  ;;  %v379_v31 = vrot.slane %v5860_v8, 1  ;;  %v1046_v44 = vrot.slane %v5888_v12, 2  ;;  %v384_v20 = vrot.slane %v5891_v32, 1  ;;  %v267_v50 = vld [vmem:[%s5595_s13 + $0x160] sm:$0x3] }
  0x35   : > { %4417 = vmatmul.mubr.msk.f32.gmra.mrb[10].mxu1 %vm411_vm1, %v5805_v62  ;;  %7185 = vst [vmem:[#allocation34_spill] sm:$0xff] %v5898_v35 }
  0x36   : > { %4677 = vmatmul.mubr.msk.f32.gmra.mrb[10].mxu0 %vm411_vm1, %v5808_v0  ;;  %4419 = vmatprep.mubr.msk.f32.mxu1 %vm411_vm1, %v5813_v5  ;;  %v1039_v0 = vrot.slane %v252_v4, 2  ;;  %v261_v5 = vld [vmem:[%s5595_s13 + $0x130] sm:$0x3] }
  0x37   : > { %4679 = vmatprep.mubr.msk.f32.mxu0 %vm411_vm1, %v5819_v13  ;;  %v5875_v13 = vsel %vm327_vm0, %v368_v51, %v369_v56  ;;  %v376_v51 = vrot.slane %v252_v4, 1  ;;  %v1047_v56 = vrot.slane %v5891_v32, 2  ;;  %v258_v4 = vld [vmem:[%s5595_s13 + $0x118] sm:$0x3] }
  0x38   : > { %7183 = vst [vmem:[#allocation32_spill] sm:$0xff] %v5875_v13 }
  0x39   : > { %4420 = vmatmul.mubr.msk.f32.gmra.mrb[12].mxu1 %vm411_vm1, %v5836_v30  ;;  %v1049_v30 = vrot.slane %v258_v4, 2 }
  0x3a   : > { %4680 = vmatmul.mubr.msk.f32.gmra.mrb[12].mxu0 %vm411_vm1, %v5841_v41  ;;  %4422 = vmatprep.mubr.msk.f32.mxu1 %vm411_vm1, %v5844_v46  ;;  %v373_v41 = vrot.slane %v5826_v27, 1  ;;  %v5881_v46 = vsel %vm990_vm2, %v1036_v52, %v1037_v58  ;;  %v1044_v52 = vrot.slane %v255_v47, 2 }
  0x3b   : > { %4682 = vmatprep.mubr.msk.f32.mxu0 %vm411_vm1, %v5849_v45  ;;  %7184 = vst [vmem:[#allocation33_spill] sm:$0xff] %v5881_v46  ;;  %v5903_v45 = vsel %vm990_vm2, %v1037_v58, %v1039_v0  ;;  %v5919_v0 = vld [vmem:[%s5595_s13 + $0x120] sm:$0xff]  ;;  %v5929_v58 = vsel %vm327_vm0, %v374_v55, %v376_v51 }
  0x3c   : > { %7186 = vst [vmem:[#allocation35_spill] sm:$0xff] %v5903_v45  ;;  %7189 = vst [vmem:[#allocation38_spill] sm:$0xff] %v5929_v58 }
  0x3d   : > { %4423 = vmatmul.mubr.msk.f32.gmra.mrb[14].mxu1 %vm411_vm1, %v5867_v9  ;;  %v5906_v9 = vsel %vm327_vm0, %v373_v41, %v374_v55  ;;  %v5922_v41 = vld [vmem:[%s5595_s13 + $0x128] sm:$0xff]  ;;  %v1051_v55 = vrot.slane %v5919_v0, 2 }
  0x3e   : > { %4683 = vmatmul.mubr.msk.f32.gmra.mrb[14].mxu0 %vm411_vm1, %v5870_v22  ;;  %4425 = vmatprep.mubr.msk.f32.mxu1 %vm411_vm1, %v5875_v13  ;;  %7187 = vst [vmem:[#allocation36_spill] sm:$0xff] %v5906_v9  ;;  %v378_v22 = vrot.slane %v5857_v57, 1  ;;  %v5911_v13 = vsel %vm990_vm2, %v1041_v11, %v1042_v26  ;;  %v5932_v11 = vsel %vm990_vm2, %v1042_v26, %v1044_v52  ;;  %v1052_v26 = vrot.slane %v5922_v41, 2 }
  0x3f   : > { %4685 = vmatprep.mubr.msk.f32.mxu0 %vm411_vm1, %v5881_v46  ;;  %7188 = vst [vmem:[#allocation37_spill] sm:$0xff] %v5911_v13  ;;  %7190 = vst [vmem:[#allocation39_spill] sm:$0xff] %v5932_v11  ;;  %v381_v46 = vrot.slane %v255_v47, 1  ;;  %v5950_v47 = vld [vmem:[%s5595_s13 + $0x138] sm:$0xff]  ;;  %v386_v52 = vrot.slane %v258_v4, 1  ;;  %v389_v10 = vrot.slane %v5922_v41, 1 }
  0x40   : > { %7193 = vst [vmem:[#allocation42_spill] sm:$0xff] %v5950_v47  ;;  %v264_v4 = vld [vmem:[%s5595_s13 + $0x148] sm:$0x3] }
  0x41   : > { %4426 = vmatmul.mubr.msk.f32.gmra.mrb[16].mxu1 %vm411_vm1, %v5898_v35  ;;  %v5937_v35 = vsel %vm327_vm0, %v378_v22, %v379_v31  ;;  %v5953_v22 = vld [vmem:[%s5595_s13 + $0x140] sm:$0xff]  ;;  %v5960_v51 = vsel %vm327_vm0, %v379_v31, %v381_v46  ;;  %v1056_v31 = vrot.slane %v5950_v47, 2  ;;  %v1059_v62 = vrot.slane %v264_v4, 2 }
  0x42   : > { %4686 = vmatmul.mubr.msk.f32.gmra.mrb[16].mxu0 %vm411_vm1, %v5903_v45  ;;  %4428 = vmatprep.mubr.msk.f32.mxu1 %vm411_vm1, %v5906_v9  ;;  %7191 = vst [vmem:[#allocation40_spill] sm:$0xff] %v5937_v35  ;;  %v383_v45 = vrot.slane %v5888_v12, 1  ;;  %v5943_v9 = vsel %vm990_vm2, %v1046_v44, %v1047_v56  ;;  %7194 = vst [vmem:[#allocation43_spill] sm:$0xff] %v5953_v22  ;;  %v1054_v44 = vrot.slane %v261_v5, 2  ;;  %v1057_v46 = vrot.slane %v5953_v22, 2 }
  0x43   : > { %4688 = vmatprep.mubr.msk.f32.mxu0 %vm411_vm1, %v5911_v13  ;;  %7192 = vst [vmem:[#allocation41_spill] sm:$0xff] %v5943_v9  ;;  %7195 = vst [vmem:[#allocation44_spill] sm:$0xff] %v5960_v51  ;;  %v5965_v13 = vsel %vm990_vm2, %v1047_v56, %v1049_v30  ;;  %v5981_v30 = vld [vmem:[%s5595_s13 + $0x150] sm:$0xff]  ;;  %v5991_v56 = vsel %vm327_vm0, %v384_v20, %v386_v52  ;;  %v394_v6 = vrot.slane %v5953_v22, 1 }
  0x44   : > { %7196 = vst [vmem:[#allocation45_spill] sm:$0xff] %v5965_v13  ;;  %7199 = vst [vmem:[#allocation48_spill] sm:$0xff] %v5981_v30 }
  0x45   : > { %4429 = vmatmul.mubr.msk.f32.gmra.mrb[18].mxu1 %vm411_vm1, %v5929_v58  ;;  %v5968_v58 = vsel %vm327_vm0, %v383_v45, %v384_v20  ;;  %v5984_v45 = vld [vmem:[%s5595_s13 + $0x158] sm:$0xff]  ;;  %7201 = vst [vmem:[#allocation50_spill] sm:$0xff] %v5991_v56  ;;  %v1061_v20 = vrot.slane %v5981_v30, 2 }
  0x46   : > { %4689 = vmatmul.mubr.msk.f32.gmra.mrb[18].mxu0 %vm411_vm1, %v5932_v11  ;;  %4431 = vmatprep.mubr.msk.f32.mxu1 %vm411_vm1, %v5937_v35  ;;  %7197 = vst [vmem:[#allocation46_spill] sm:$0xff] %v5968_v58  ;;  %v388_v11 = vrot.slane %v5919_v0, 1  ;;  %v5973_v35 = vsel %vm990_vm2, %v1051_v55, %v1052_v26  ;;  %7200 = vst [vmem:[#allocation49_spill] sm:$0xff] %v5984_v45  ;;  %v5994_v55 = vsel %vm990_vm2, %v1052_v26, %v1054_v44 }
  0x47   : > { %4691 = vmatprep.mubr.msk.f32.mxu0 %vm411_vm1, %v5943_v9  ;;  %7198 = vst [vmem:[#allocation47_spill] sm:$0xff] %v5973_v35  ;;  %7202 = vst [vmem:[#allocation51_spill] sm:$0xff] %v5994_v55  ;;  %v391_v9 = vrot.slane %v261_v5, 1  ;;  %v1062_v26 = vrot.slane %v5984_v45, 2  ;;  %v6012_v5 = vld [vmem:[%s5595_s13 + $0x168] sm:$0xff]  ;;  %v396_v44 = vrot.slane %v264_v4, 1 }
  0x48   : > { %7205 = vst [vmem:[#allocation54_spill] sm:$0xff] %v6012_v5  ;;  %v399_v63 = vrot.slane %v5984_v45, 1  ;;  %v270_v4 = vld [vmem:[%s5595_s13 + $0x178] sm:$0x3]  ;;  %v403_v54 = vrot.slane %v6012_v5, 1 }
  0x49   : > { %4432 = vmatmul.mubr.msk.f32.gmra.mrb[20].mxu1 %vm411_vm1, %v5960_v51  ;;  %v5999_v51 = vsel %vm327_vm0, %v388_v11, %v389_v10  ;;  %v6015_v11 = vld [vmem:[%s5595_s13 + $0x170] sm:$0xff]  ;;  %v6022_v52 = vsel %vm327_vm0, %v389_v10, %v391_v9  ;;  %v1066_v10 = vrot.slane %v6012_v5, 2  ;;  %v1069_v40 = vrot.slane %v270_v4, 2 }
  0x4a   : > { %4692 = vmatmul.mubr.msk.f32.gmra.mrb[20].mxu0 %vm411_vm1, %v5965_v13  ;;  %4434 = vmatprep.mubr.msk.f32.mxu1 %vm411_vm1, %v5968_v58  ;;  %7203 = vst [vmem:[#allocation52_spill] sm:$0xff] %v5999_v51  ;;  %v393_v13 = vrot.slane %v5950_v47, 1  ;;  %v6005_v58 = vsel %vm990_vm2, %v1056_v31, %v1057_v46  ;;  %7206 = vst [vmem:[#allocation55_spill] sm:$0xff] %v6015_v11  ;;  %v1064_v31 = vrot.slane %v267_v50, 2  ;;  %v1067_v9 = vrot.slane %v6015_v11, 2 }
  0x4b   : > { %4694 = vmatprep.mubr.msk.f32.mxu0 %vm411_vm1, %v5973_v35  ;;  %7204 = vst [vmem:[#allocation53_spill] sm:$0xff] %v6005_v58  ;;  %7207 = vst [vmem:[#allocation56_spill] sm:$0xff] %v6022_v52  ;;  %v6027_v35 = vsel %vm990_vm2, %v1057_v46, %v1059_v62  ;;  %v6043_v62 = vld [vmem:[%s5595_s13 + $0x180] sm:$0xff]  ;;  %v6053_v46 = vsel %vm327_vm0, %v394_v6, %v396_v44  ;;  %v406_v44 = vrot.slane %v270_v4, 1 }
  0x4c   : > { %7208 = vst [vmem:[#allocation57_spill] sm:$0xff] %v6027_v35  ;;  %7211 = vst [vmem:[#allocation60_spill] sm:$0xff] %v6043_v62 }
  0x4d   : > { %4435 = vmatmul.mubr.msk.f32.gmra.mrb[22].mxu1 %vm411_vm1, %v5991_v56  ;;  %v6030_v56 = vsel %vm327_vm0, %v393_v13, %v394_v6  ;;  %v6046_v13 = vld [vmem:[%s5595_s13 + $0x188] sm:$0xff]  ;;  %7213 = vst [vmem:[#allocation62_spill] sm:$0xff] %v6053_v46  ;;  %v1931_v6 = vrot.slane %v6043_v62, 2 }
  0x4e   : > { %4695 = vmatmul.mubr.msk.f32.gmra.mrb[22].mxu0 %vm411_vm1, %v5994_v55  ;;  %4437 = vmatprep.mubr.msk.f32.mxu1 %vm411_vm1, %v5999_v51  ;;  %7209 = vst [vmem:[#allocation58_spill] sm:$0xff] %v6030_v56  ;;  %v398_v55 = vrot.slane %v5981_v30, 1  ;;  %v6035_v51 = vsel %vm990_vm2, %v1061_v20, %v1062_v26  ;;  %7212 = vst [vmem:[#allocation61_spill] sm:$0xff] %v6046_v13  ;;  %v6056_v20 = vsel %vm990_vm2, %v1062_v26, %v1064_v31 }
  0x4f   : > { %4697 = vmatprep.mubr.msk.f32.mxu0 %vm411_vm1, %v6005_v58  ;;  %7210 = vst [vmem:[#allocation59_spill] sm:$0xff] %v6035_v51  ;;  %7214 = vst [vmem:[#allocation63_spill] sm:$0xff] %v6056_v20  ;;  %v401_v58 = vrot.slane %v267_v50, 1  ;;  %v1932_v26 = vrot.slane %v6046_v13, 2  ;;  %v273_v50 = vld [vmem:[%s5595_s13 + $0x190] sm:$0x3] }
  0x50   : > { %v7127_v31 = vrot.slane %v6046_v13, 1 }
  0x51   : > { %4438 = vmatmul.mubr.msk.f32.gmra.mrb[24].mxu1 %vm411_vm1, %v6022_v52  ;;  %v6061_v52 = vsel %vm327_vm0, %v398_v55, %v399_v63  ;;  %v6078_v55 = vsel %vm327_vm0, %v399_v63, %v401_v58  ;;  %v6093_v63 = vld [vmem:[%s5595_s13 + $0x1a0] sm:$0xff] }
  0x52   : > { %4698 = vmatmul.mubr.msk.f32.gmra.mrb[24].mxu0 %vm411_vm1, %v6027_v35  ;;  %4440 = vmatprep.mubr.msk.f32.mxu1 %vm411_vm1, %v6030_v56  ;;  %7215 = vst [vmem:[#allocation64_spill] sm:$0xff] %v6061_v52  ;;  %v404_v35 = vrot.slane %v6015_v11, 1  ;;  %v6066_v56 = vsel %vm990_vm2, %v1066_v10, %v1067_v9  ;;  %7216 = vst [vmem:[#allocation65_spill] sm:$0xff] %v6078_v55  ;;  %v6084_v10 = vsel %vm990_vm2, %v1067_v9, %v1069_v40  ;;  %v6111_v9 = vld [vmem:[%s5595_s13 + $0x1a8] sm:$0x3] }
  0x53   : > { %4700 = vmatprep.mubr.msk.f32.mxu0 %vm411_vm1, %v6035_v51  ;;  %v7126_v58 = vrot.slane %v6093_v63, 1  ;;  %7219 = vst [vmem:[#allocation68_spill] sm:$0xff] %v6111_v9 }
  0x54   : > { %v6087_v51 = vsel %vm327_vm0, %v403_v54, %v404_v35  ;;  %v6108_v54 = vsel %vm327_vm0, %v404_v35, %v406_v44  ;;  %v3782_v35 = vld [vmem:[%s7027_s1 + $0x38] sm:$0xff] }
  0x55   : > { %4441 = vmatmul.mubr.msk.f32.gmra.mrb[26].mxu1 %vm411_vm1, %v6053_v46  ;;  %7217 = vst [vmem:[#allocation66_spill] sm:$0xff] %v6087_v51  ;;  %v1665_v46 = vrot.slane %v273_v50, 1 }
  0x56   : > { %4701 = vmatmul.mubr.msk.f32.gmra.mrb[26].mxu0 %vm411_vm1, %v6056_v20  ;;  %4443 = vmatprep.mubr.msk.f32.mxu1 %vm411_vm1, %v6061_v52  ;;  %v1934_v20 = vrot.slane %v273_v50, 2  ;;  %v6090_v52 = vsel %vm990_vm2, %v1931_v6, %v1932_v26  ;;  %v3781_v6 = vld [vmem:[%s7027_s1 + $0x30] sm:$0xff] }
  0x57   : > { %4703 = vmatprep.mubr.msk.f32.mxu0 %vm411_vm1, %v6066_v56  ;;  %7218 = vst [vmem:[#allocation67_spill] sm:$0xff] %v6090_v52  ;;  %v6101_v40 = vsel %vm327_vm0, %v7127_v31, %v1665_v46  ;;  %v2470_v46 = vrot.slane %v6111_v9, 1  ;;  %v6144_v44 = vpack.c.bf16 %v3782_v35, %v3781_v6  ;;  %v6267_v6 = vld [vmem:[%s5595_s13 + $0x198] sm:$0xff]  ;;  %v994_v35 = vrot.slane %v5619_v23, 2  ;;  %v3816_v23 = vld [vmem:[%s7027_s1 + $0x48] sm:$0xff]  ;;  %v7252_v9 = vld [vmem:[#allocation37_spill] sm:$0xff]  ;;  %s6976_s13 = scalar_lea.hbm %s7031_s5, %s4056_s9 }
  0x58   : > { %v6116_v4 = vsel %vm990_vm2, %v1932_v26, %v1934_v20  ;;  %v3951_v20 = vld [vmem:[%s7027_s1 + $0x80] sm:$0xff]  ;;  %v3952_v26 = vld [vmem:[%s7027_s1 + $0x88] sm:$0xff]  ;;  %7221 = vst [vmem:[#allocation70_spill] sm:$0xff] %v6267_v6 }
  0x59   : > { %4444 = vmatmul.mubr.msk.f32.gmra.mrb[28].mxu1 %vm411_vm1, %v6078_v55  ;;  %7220 = vst [vmem:[#allocation69_spill] sm:$0xff] %v6116_v4  ;;  %v6130_v50 = vsel %vm327_vm0, %v7126_v58, %v2470_v46  ;;  %v6148_v46 = vpack.c.bf16 %v3952_v26, %v3951_v20  ;;  %v3005_v26 = vld [vmem:[%s7028_s2] sm:$0xff] }
  0x5a   : > { %4704 = vmatmul.mubr.msk.f32.gmra.mrb[28].mxu0 %vm411_vm1, %v6084_v10  ;;  %4446 = vmatprep.mubr.msk.f32.mxu1 %vm411_vm1, %v6087_v51 }
  0x5b   : > { %4706 = vmatprep.mubr.msk.f32.mxu0 %vm411_vm1, %v6090_v52  ;;  %v7254_v52 = vld [vmem:[#allocation39_spill] sm:$0xff] }
  0x5d   : > { %4447 = vmatmul.mubr.msk.f32.gmra.mrb[30].mxu1 %vm411_vm1, %v6108_v54 }
  0x5e   : > { %4707 = vmatmul.mubr.msk.f32.gmra.mrb[30].mxu0 %vm411_vm1, %v6116_v4  ;;  %4453 = vmatprep.mubr.msk.f32.mxu1 %vm411_vm1, %v5604_v16  ;;  %v7248_v4 = vld [vmem:[#allocation33_spill] sm:$0xff] }
  0x5f   : > { %4713 = vmatprep.mubr.msk.f32.mxu0 %vm411_vm1, %v5632_v33 }
  0x61   : > { %4454 = vmatmul.mubr.msk.f32.vlgmr.msra.gmra.mrb[0].mxu1 %vm411_vm1, %v5607_v17 }
  0x62   : > { %4928 = vmatpush3.bf16.msra.mxu1 %v5621_v24  ;;  %4714 = vmatmul.mubr.msk.f32.vlgmr.msra.gmra.mrb[0].mxu0 %vm411_vm1, %v5635_v34  ;;  %v991_v24 = vrot.slane %v5604_v16, 2 }
  0x63   : > { %4948 = vmatpush3.bf16.msra.mxu0 %v5627_v29  ;;  %4456 = vmatprep.mubr.msk.f32.mxu1 %vm411_vm1, %v5610_v18  ;;  %v992_v29 = vrot.slane %v5607_v17, 2  ;;  %v3815_v17 = vld [vmem:[%s7027_s1 + $0x40] sm:$0xff] }
  0x64   : > { %4716 = vmatprep.mubr.msk.f32.mxu0 %vm411_vm1, %v5638_v36  ;;  %4930 = vmatprep.subr.bf16.mxu1 %v6144_v44  ;;  %v6299_v58 = vpack.c.bf16 %v3816_v23, %v3815_v17  ;;  %v7229_v17 = vld [vmem:[#allocation24_spill] sm:$0xff]  ;;  %v7230_v23 = vld [vmem:[#allocation15_spill] sm:$0xff] }
  0x65   : > { %4457 = vmatmul.mubr.msk.f32.gmra.mrb[2].mxu1 %vm411_vm1, %v5615_v21  ;;  %4950 = vmatprep.subr.bf16.mxu0 %v6148_v46  ;;  %v993_v16 = vsel %vm990_vm2, %v991_v24, %v992_v29  ;;  %v995_v20 = vsel %vm990_vm2, %v992_v29, %v994_v35  ;;  %v3006_v24 = vld [vmem:[%s7028_s2 + $0x8] sm:$0xff]  ;;  %v7226_v29 = vld [vmem:[#allocation11_spill] sm:$0xff] }
  0x66   : > { %4717 = vmatmul.mubr.msk.f32.gmra.mrb[2].mxu0 %vm411_vm1, %v5649_v42  ;;  %4459 = vmatprep.mubr.msk.f32.mxu1 %vm411_vm1, %v5632_v33  ;;  %v6302_v31 = vpack.c.bf16 %v3006_v24, %v3005_v26  ;;  %v7227_v35 = vld [vmem:[#allocation22_spill] sm:$0xff]  ;;  %v7232_v26 = vld [vmem:[#allocation17_spill] sm:$0xff]  ;;  %v7233_v24 = vld [vmem:[#allocation28_spill] sm:$0xff] }
  0x67   : > { %4719 = vmatprep.mubr.msk.f32.mxu0 %vm411_vm1, %v5665_v48 }
  0x69   : > { %4460 = vmatmul.mubr.msk.f32.gmra.mrb[4].mxu1 %vm411_vm1, %v5635_v34 }
  0x6a   : > { %4720 = vmatmul.mubr.msk.f32.gmra.mrb[4].mxu0 %vm411_vm1, %v5676_v53  ;;  %4462 = vmatprep.mubr.msk.f32.mxu1 %vm411_vm1, %v5638_v36 }
  0x6b   : > { %4722 = vmatprep.mubr.msk.f32.mxu0 %vm411_vm1, %v5701_v1 }
  0x6d   : > { %4463 = vmatmul.mubr.msk.f32.gmra.mrb[6].mxu1 %vm411_vm1, %v5649_v42 }
  0x6e   : > { %4723 = vmatmul.mubr.msk.f32.gmra.mrb[6].mxu0 %vm411_vm1, %v5704_v2  ;;  %4465 = vmatprep.mubr.msk.f32.mxu1 %vm411_vm1, %v5665_v48 }
  0x6f   : > { %4725 = vmatprep.mubr.msk.f32.mxu0 %vm411_vm1, %v5733_v14 }
  0x71   : > { %4466 = vmatmul.mubr.msk.f32.gmra.mrb[8].mxu1 %vm411_vm1, %v5676_v53 }
  0x72   : > { %4726 = vmatmul.mubr.msk.f32.gmra.mrb[8].mxu0 %vm411_vm1, %v5736_v15  ;;  %4468 = vmatprep.mubr.msk.f32.mxu1 %vm411_vm1, %v5701_v1 }
  0x73   : > { %4728 = vmatprep.mubr.msk.f32.mxu0 %vm411_vm1, %v5764_v38 }
  0x75   : > { %4469 = vmatmul.mubr.msk.f32.gmra.mrb[10].mxu1 %vm411_vm1, %v5704_v2 }
  0x76   : > { %4729 = vmatmul.mubr.msk.f32.gmra.mrb[10].mxu0 %vm411_vm1, %v5767_v39  ;;  %4471 = vmatprep.mubr.msk.f32.mxu1 %vm411_vm1, %v5733_v14 }
  0x77   : > { %4731 = vmatprep.mubr.msk.f32.mxu0 %vm411_vm1, %v5795_v60 }
  0x79   : > { %4472 = vmatmul.mubr.msk.f32.gmra.mrb[12].mxu1 %vm411_vm1, %v5736_v15 }
  0x7a   : > { %4732 = vmatmul.mubr.msk.f32.gmra.mrb[12].mxu0 %vm411_vm1, %v5798_v61  ;;  %4474 = vmatprep.mubr.msk.f32.mxu1 %vm411_vm1, %v5764_v38 }
  0x7b   : > { %4734 = vmatprep.mubr.msk.f32.mxu0 %vm411_vm1, %v5826_v27 }
  0x7d   : > { %4475 = vmatmul.mubr.msk.f32.gmra.mrb[14].mxu1 %vm411_vm1, %v5767_v39 }
  0x7e   : > { %4735 = vmatmul.mubr.msk.f32.gmra.mrb[14].mxu0 %vm411_vm1, %v5829_v28  ;;  %4477 = vmatprep.mubr.msk.f32.mxu1 %vm411_vm1, %v5795_v60 }
  0x7f   : > { %4737 = vmatprep.mubr.msk.f32.mxu0 %vm411_vm1, %v5857_v57 }
  0x81   : > { %4478 = vmatmul.mubr.msk.f32.gmra.mrb[16].mxu1 %vm411_vm1, %v5798_v61 }
  0x82   : > { %4738 = vmatmul.mubr.msk.f32.gmra.mrb[16].mxu0 %vm411_vm1, %v5860_v8  ;;  %4480 = vmatprep.mubr.msk.f32.mxu1 %vm411_vm1, %v5826_v27 }
  0x83   : > { %4740 = vmatprep.mubr.msk.f32.mxu0 %vm411_vm1, %v5888_v12 }
  0x85   : > { %4481 = vmatmul.mubr.msk.f32.gmra.mrb[18].mxu1 %vm411_vm1, %v5829_v28 }
  0x86   : > { %4741 = vmatmul.mubr.msk.f32.gmra.mrb[18].mxu0 %vm411_vm1, %v5891_v32  ;;  %4483 = vmatprep.mubr.msk.f32.mxu1 %vm411_vm1, %v5857_v57 }
  0x87   : > { %4743 = vmatprep.mubr.msk.f32.mxu0 %vm411_vm1, %v5919_v0 }
  0x89   : > { %4484 = vmatmul.mubr.msk.f32.gmra.mrb[20].mxu1 %vm411_vm1, %v5860_v8 }
  0x8a   : > { %4744 = vmatmul.mubr.msk.f32.gmra.mrb[20].mxu0 %vm411_vm1, %v5922_v41  ;;  %4486 = vmatprep.mubr.msk.f32.mxu1 %vm411_vm1, %v5888_v12 }
  0x8b   : > { %4746 = vmatprep.mubr.msk.f32.mxu0 %vm411_vm1, %v5950_v47 }
  0x8d   : > { %4487 = vmatmul.mubr.msk.f32.gmra.mrb[22].mxu1 %vm411_vm1, %v5891_v32 }
  0x8e   : > { %4747 = vmatmul.mubr.msk.f32.gmra.mrb[22].mxu0 %vm411_vm1, %v5953_v22  ;;  %4489 = vmatprep.mubr.msk.f32.mxu1 %vm411_vm1, %v5919_v0 }
  0x8f   : > { %4749 = vmatprep.mubr.msk.f32.mxu0 %vm411_vm1, %v5981_v30 }
  0x91   : > { %4490 = vmatmul.mubr.msk.f32.gmra.mrb[24].mxu1 %vm411_vm1, %v5922_v41 }
  0x92   : > { %4750 = vmatmul.mubr.msk.f32.gmra.mrb[24].mxu0 %vm411_vm1, %v5984_v45  ;;  %4492 = vmatprep.mubr.msk.f32.mxu1 %vm411_vm1, %v5950_v47  ;;  %v7264_v47 = vrot.slane %v6046_v13, 1 }
  0x93   : > { %4752 = vmatprep.mubr.msk.f32.mxu0 %vm411_vm1, %v6012_v5 }
  0x95   : > { %4493 = vmatmul.mubr.msk.f32.gmra.mrb[26].mxu1 %vm411_vm1, %v5953_v22  ;;  %v7262_v22 = vld [vmem:[#allocation51_spill] sm:$0xff] }
  0x96   : > { %4753 = vmatmul.mubr.msk.f32.gmra.mrb[26].mxu0 %vm411_vm1, %v6015_v11  ;;  %4495 = vmatprep.mubr.msk.f32.mxu1 %vm411_vm1, %v5981_v30  ;;  %v7260_v30 = vld [vmem:[#allocation47_spill] sm:$0xff] }
  0x97   : > { %4755 = vmatprep.mubr.msk.f32.mxu0 %vm411_vm1, %v6043_v62 }
  0x99   : > { %4496 = vmatmul.mubr.msk.f32.gmra.mrb[28].mxu1 %vm411_vm1, %v5984_v45  ;;  %v7258_v45 = vld [vmem:[#allocation45_spill] sm:$0xff] }
  0x9a   : > { %4756 = vmatmul.mubr.msk.f32.gmra.mrb[28].mxu0 %vm411_vm1, %v6046_v13  ;;  %4498 = vmatprep.mubr.msk.f32.mxu1 %vm411_vm1, %v6012_v5  ;;  %v7256_v5 = vld [vmem:[#allocation41_spill] sm:$0xff]  ;;  %v7268_v13 = vld [vmem:[#allocation63_spill] sm:$0xff] }
  0x9b   : > { %4758 = vmatprep.mubr.msk.f32.mxu0 %vm411_vm1, %v6267_v6 }
  0x9d   : > { %4499 = vmatmul.mubr.msk.f32.gmra.mrb[30].mxu1 %vm411_vm1, %v6015_v11  ;;  %v7250_v11 = vld [vmem:[#allocation35_spill] sm:$0xff] }
  0x9e   : > { %4759 = vmatmul.mubr.msk.f32.gmra.mrb[30].mxu0 %vm411_vm1, %v6093_v63  ;;  %4505 = vmatprep.mubr.msk.f32.mxu1 %vm411_vm1, %v993_v16  ;;  %v7228_v16 = vld [vmem:[#allocation13_spill] sm:$0xff] }
  0x9f   : > { %4765 = vmatprep.mubr.msk.f32.mxu0 %vm411_vm1, %v5688_v59  ;;  %v7246_v59 = vld [vmem:[#allocation31_spill] sm:$0xff] }
  0xa1   : > { %4506 = vmatmul.mubr.msk.f32.vlgmr.msra.gmra.mrb[0].mxu1 %vm411_vm1, %v995_v20  ;;  %v7231_v20 = vld [vmem:[#allocation26_spill] sm:$0xff] }
  0xa2   : > { %4932 = vmatpush3.bf16.msra.mxu1 %v6144_v44  ;;  %4766 = vmatmul.mubr.msk.f32.vlgmr.msra.gmra.mrb[0].mxu0 %vm411_vm1, %v5712_v3  ;;  %v7223_v44 = vld [vmem:[#allocation18_spill] sm:$0xff]  ;;  %v7244_v3 = vld [vmem:[#allocation29_spill] sm:$0xff] }
  0xa3   : > { %4952 = vmatpush3.bf16.msra.mxu0 %v6148_v46  ;;  %4508 = vmatprep.mubr.msk.f32.mxu1 %vm411_vm1, %v5642_v37  ;;  %v7222_v37 = vld [vmem:[#allocation7_spill] sm:$0xff]  ;;  %v7224_v46 = vld [vmem:[#allocation9_spill] sm:$0xff] }
  0xa4   : > { %4768 = vmatprep.mubr.msk.f32.mxu0 %vm411_vm1, %v5720_v7  ;;  %4934 = vmatprep.subr.bf16.mxu1 %v6299_v58  ;;  %v7242_v7 = vld [vmem:[#allocation27_spill] sm:$0xff] }
  0xa5   : > { %4509 = vmatmul.mubr.msk.f32.gmra.mrb[2].mxu1 %vm411_vm1, %v5655_v43  ;;  %4954 = vmatprep.subr.bf16.mxu0 %v6302_v31  ;;  %v7225_v43 = vld [vmem:[#allocation20_spill] sm:$0xff] }
  0xa6   : > { %4769 = vmatmul.mubr.msk.f32.gmra.mrb[2].mxu0 %vm411_vm1, %v5743_v19  ;;  %4511 = vmatprep.mubr.msk.f32.mxu1 %vm411_vm1, %v5670_v49  ;;  %v7240_v19 = vld [vmem:[#allocation25_spill] sm:$0xff] }
  0xa7   : > { %4771 = vmatprep.mubr.msk.f32.mxu0 %vm411_vm1, %v5751_v25  ;;  %v7238_v25 = vld [vmem:[#allocation23_spill] sm:$0xff] }
  0xa9   : > { %4512 = vmatmul.mubr.msk.f32.gmra.mrb[4].mxu1 %vm411_vm1, %v7222_v37 }
  0xaa   : > { %4772 = vmatmul.mubr.msk.f32.gmra.mrb[4].mxu0 %vm411_vm1, %v7223_v44  ;;  %4514 = vmatprep.mubr.msk.f32.mxu1 %vm411_vm1, %v7224_v46  ;;  %v7236_v44 = vld [vmem:[#allocation21_spill] sm:$0xff] }
  0xab   : > { %4774 = vmatprep.mubr.msk.f32.mxu0 %vm411_vm1, %v7225_v43  ;;  %v7234_v43 = vld [vmem:[#allocation19_spill] sm:$0xff] }
  0xad   : > { %4515 = vmatmul.mubr.msk.f32.gmra.mrb[6].mxu1 %vm411_vm1, %v7226_v29 }
  0xae   : > { %4775 = vmatmul.mubr.msk.f32.gmra.mrb[6].mxu0 %vm411_vm1, %v7227_v35  ;;  %4517 = vmatprep.mubr.msk.f32.mxu1 %vm411_vm1, %v7228_v16  ;;  %v7235_v35 = vld [vmem:[#allocation30_spill] sm:$0xff] }
  0xaf   : > { %4777 = vmatprep.mubr.msk.f32.mxu0 %vm411_vm1, %v7229_v17  ;;  %v7237_v17 = vld [vmem:[#allocation32_spill] sm:$0xff] }
  0xb1   : > { %4518 = vmatmul.mubr.msk.f32.gmra.mrb[8].mxu1 %vm411_vm1, %v7230_v23 }
  0xb2   : > { %4778 = vmatmul.mubr.msk.f32.gmra.mrb[8].mxu0 %vm411_vm1, %v7231_v20  ;;  %4520 = vmatprep.mubr.msk.f32.mxu1 %vm411_vm1, %v7232_v26  ;;  %v7239_v20 = vld [vmem:[#allocation34_spill] sm:$0xff] }
  0xb3   : > { %4780 = vmatprep.mubr.msk.f32.mxu0 %vm411_vm1, %v7233_v24  ;;  %v7241_v24 = vld [vmem:[#allocation36_spill] sm:$0xff] }
  0xb5   : > { %4521 = vmatmul.mubr.msk.f32.gmra.mrb[10].mxu1 %vm411_vm1, %v7234_v43 }
  0xb6   : > { %4781 = vmatmul.mubr.msk.f32.gmra.mrb[10].mxu0 %vm411_vm1, %v7235_v35  ;;  %4523 = vmatprep.mubr.msk.f32.mxu1 %vm411_vm1, %v7236_v44  ;;  %v7243_v35 = vld [vmem:[#allocation38_spill] sm:$0xff] }
  0xb7   : > { %4783 = vmatprep.mubr.msk.f32.mxu0 %vm411_vm1, %v7237_v17  ;;  %v7245_v17 = vld [vmem:[#allocation40_spill] sm:$0xff] }
  0xb9   : > { %4524 = vmatmul.mubr.msk.f32.gmra.mrb[12].mxu1 %vm411_vm1, %v7238_v25 }
  0xba   : > { %4784 = vmatmul.mubr.msk.f32.gmra.mrb[12].mxu0 %vm411_vm1, %v7239_v20  ;;  %4526 = vmatprep.mubr.msk.f32.mxu1 %vm411_vm1, %v7240_v19  ;;  %v7247_v20 = vld [vmem:[#allocation44_spill] sm:$0xff] }
  0xbb   : > { %4786 = vmatprep.mubr.msk.f32.mxu0 %vm411_vm1, %v7241_v24  ;;  %v7249_v24 = vld [vmem:[#allocation46_spill] sm:$0xff] }
  0xbd   : > { %4527 = vmatmul.mubr.msk.f32.gmra.mrb[14].mxu1 %vm411_vm1, %v7242_v7 }
  0xbe   : > { %4787 = vmatmul.mubr.msk.f32.gmra.mrb[14].mxu0 %vm411_vm1, %v7243_v35  ;;  %4529 = vmatprep.mubr.msk.f32.mxu1 %vm411_vm1, %v7244_v3  ;;  %v7251_v35 = vld [vmem:[#allocation50_spill] sm:$0xff] }
  0xbf   : > { %4789 = vmatprep.mubr.msk.f32.mxu0 %vm411_vm1, %v7245_v17  ;;  %v7253_v17 = vld [vmem:[#allocation52_spill] sm:$0xff] }
  0xc1   : > { %4530 = vmatmul.mubr.msk.f32.gmra.mrb[16].mxu1 %vm411_vm1, %v7246_v59 }
  0xc2   : > { %4790 = vmatmul.mubr.msk.f32.gmra.mrb[16].mxu0 %vm411_vm1, %v7247_v20  ;;  %4532 = vmatprep.mubr.msk.f32.mxu1 %vm411_vm1, %v7248_v4  ;;  %v7255_v20 = vld [vmem:[#allocation56_spill] sm:$0xff] }
  0xc3   : > { %4792 = vmatprep.mubr.msk.f32.mxu0 %vm411_vm1, %v7249_v24  ;;  %v7257_v24 = vld [vmem:[#allocation58_spill] sm:$0xff] }
  0xc5   : > { %4533 = vmatmul.mubr.msk.f32.gmra.mrb[18].mxu1 %vm411_vm1, %v7250_v11 }
  0xc6   : > { %4793 = vmatmul.mubr.msk.f32.gmra.mrb[18].mxu0 %vm411_vm1, %v7251_v35  ;;  %4535 = vmatprep.mubr.msk.f32.mxu1 %vm411_vm1, %v7252_v9  ;;  %v7259_v35 = vld [vmem:[#allocation62_spill] sm:$0xff] }
  0xc7   : > { %4795 = vmatprep.mubr.msk.f32.mxu0 %vm411_vm1, %v7253_v17  ;;  %v7261_v17 = vld [vmem:[#allocation64_spill] sm:$0xff] }
  0xc9   : > { %4536 = vmatmul.mubr.msk.f32.gmra.mrb[20].mxu1 %vm411_vm1, %v7254_v52 }
  0xca   : > { %4796 = vmatmul.mubr.msk.f32.gmra.mrb[20].mxu0 %vm411_vm1, %v7255_v20  ;;  %4538 = vmatprep.mubr.msk.f32.mxu1 %vm411_vm1, %v7256_v5  ;;  %v1662_v20 = vrot.slane %v6043_v62, 1  ;;  %v7265_v62 = vld [vmem:[#allocation57_spill] sm:$0xff] }
  0xcb   : > { %4798 = vmatprep.mubr.msk.f32.mxu0 %vm411_vm1, %v7257_v24  ;;  %v7263_v24 = vld [vmem:[#allocation53_spill] sm:$0xff] }
  0xcd   : > { %4539 = vmatmul.mubr.msk.f32.gmra.mrb[22].mxu1 %vm411_vm1, %v7258_v45 }
  0xce   : > { %4799 = vmatmul.mubr.msk.f32.gmra.mrb[22].mxu0 %vm411_vm1, %v7259_v35  ;;  %4541 = vmatprep.mubr.msk.f32.mxu1 %vm411_vm1, %v7260_v30  ;;  %v2467_v35 = vrot.slane %v6267_v6, 1 }
  0xcf   : > { %4801 = vmatprep.mubr.msk.f32.mxu0 %vm411_vm1, %v7261_v17  ;;  %v6415_v17 = vsel %vm327_vm0, %v1662_v20, %v7264_v47  ;;  %v7294_v47 = vld [vmem:[#allocation30_spill] sm:$0xff] }
  0xd1   : > { %4542 = vmatmul.mubr.msk.f32.gmra.mrb[24].mxu1 %vm411_vm1, %v7262_v22 }
  0xd2   : > { %4802 = vmatmul.mubr.msk.f32.gmra.mrb[24].mxu0 %vm411_vm1, %v6078_v55  ;;  %4544 = vmatprep.mubr.msk.f32.mxu1 %vm411_vm1, %v7263_v24  ;;  %v7266_v55 = vld [vmem:[#allocation59_spill] sm:$0xff] }
  0xd3   : > { %4804 = vmatprep.mubr.msk.f32.mxu0 %vm411_vm1, %v6087_v51  ;;  %v7267_v51 = vrot.slane %v6093_v63, 1 }
  0xd5   : > { %4545 = vmatmul.mubr.msk.f32.gmra.mrb[26].mxu1 %vm411_vm1, %v7265_v62  ;;  %v2469_v6 = vsel %vm327_vm0, %v2467_v35, %v7267_v51  ;;  %v7296_v51 = vld [vmem:[#allocation34_spill] sm:$0xff] }
  0xd6   : > { %4805 = vmatmul.mubr.msk.f32.gmra.mrb[26].mxu0 %vm411_vm1, %v6108_v54  ;;  %4547 = vmatprep.mubr.msk.f32.mxu1 %vm411_vm1, %v7266_v55 }
  0xd7   : > { %4807 = vmatprep.mubr.msk.f32.mxu0 %vm411_vm1, %v6415_v17 }
  0xd9   : > { %4548 = vmatmul.mubr.msk.f32.gmra.mrb[28].mxu1 %vm411_vm1, %v7268_v13 }
  0xda   : > { %4808 = vmatmul.mubr.msk.f32.gmra.mrb[28].mxu0 %vm411_vm1, %v6101_v40  ;;  %4550 = vmatprep.mubr.msk.f32.mxu1 %vm411_vm1, %v6066_v56 }
  0xdb   : > { %4810 = vmatprep.mubr.msk.f32.mxu0 %vm411_vm1, %v2469_v6 }
  0xdd   : > { %4551 = vmatmul.mubr.msk.f32.gmra.mrb[30].mxu1 %vm411_vm1, %v6084_v10 }
  0xde   : > { %4811 = vmatmul.mubr.msk.f32.gmra.mrb[30].mxu0 %vm411_vm1, %v6130_v50  ;;  %4557 = vmatprep.mubr.msk.f32.mxu1 %vm411_vm1, %v5610_v18  ;;  %v7269_v18 = vld [vmem:[#allocation42_spill] sm:$0xff]  ;;  %v6703_v50 = vld [vmem:[%s7029_s3] ss:$0 sm:$0xff] }
  0xdf   : > { %4817 = vmatprep.mubr.msk.f32.mxu0 %vm411_vm1, %v5670_v49  ;;  %v7274_v49 = vld [vmem:[#allocation54_spill] sm:$0xff] }
  0xe1   : > { %4558 = vmatmul.mubr.msk.f32.vlgmr.msra.gmra.mrb[0].mxu1 %vm411_vm1, %v5615_v21  ;;  %v7270_v21 = vld [vmem:[#allocation43_spill] sm:$0xff] }
  0xe2   : > { %4936 = vmatpush3.bf16.msra.mxu1 %v6299_v58  ;;  %4818 = vmatmul.mubr.msk.f32.vlgmr.msra.gmra.mrb[0].mxu0 %vm411_vm1, %v7222_v37  ;;  %v7309_v58 = vld [vmem:[#allocation66_spill] sm:$0xff] }
  0xe3   : > { %4956 = vmatpush3.bf16.msra.mxu0 %v6302_v31  ;;  %4560 = vmatprep.mubr.msk.f32.mxu1 %vm411_vm1, %v5632_v33  ;;  %v7271_v33 = vld [vmem:[#allocation48_spill] sm:$0xff]  ;;  %v7306_v31 = vld [vmem:[#allocation62_spill] sm:$0xff] }
  0xe4   : > { %4820 = vmatprep.mubr.msk.f32.mxu0 %vm411_vm1, %v7224_v46 }
  0xe5   : > { %4561 = vmatmul.mubr.msk.f32.gmra.mrb[2].mxu1 %vm411_vm1, %v5635_v34  ;;  %v7272_v34 = vld [vmem:[#allocation70_spill] sm:$0xff] }
  0xe6   : > { %4821 = vmatmul.mubr.msk.f32.gmra.mrb[2].mxu0 %vm411_vm1, %v7226_v29  ;;  %4563 = vmatprep.mubr.msk.f32.mxu1 %vm411_vm1, %v5638_v36  ;;  %v2736_v36 = vrot.slane %v7272_v34, 2 }
  0xe7   : > { %4823 = vmatprep.mubr.msk.f32.mxu0 %vm411_vm1, %v7228_v16 }
  0xe9   : > { %4564 = vmatmul.mubr.msk.f32.gmra.mrb[4].mxu1 %vm411_vm1, %v5649_v42  ;;  %v2737_v42 = vrot.slane %v6093_v63, 2  ;;  %v7308_v63 = vld [vmem:[#allocation65_spill] sm:$0xff] }
  0xea   : > { %4824 = vmatmul.mubr.msk.f32.gmra.mrb[4].mxu0 %vm411_vm1, %v7230_v23  ;;  %4566 = vmatprep.mubr.msk.f32.mxu1 %vm411_vm1, %v5665_v48  ;;  %v7273_v48 = vld [vmem:[#allocation49_spill] sm:$0xff] }
  0xeb   : > { %4826 = vmatprep.mubr.msk.f32.mxu0 %vm411_vm1, %v7232_v26 }
  0xed   : > { %4567 = vmatmul.mubr.msk.f32.gmra.mrb[6].mxu1 %vm411_vm1, %v5676_v53  ;;  %v7275_v53 = vld [vmem:[#allocation67_spill] sm:$0xff] }
  0xee   : > { %4827 = vmatmul.mubr.msk.f32.gmra.mrb[6].mxu0 %vm411_vm1, %v7234_v43  ;;  %4569 = vmatprep.mubr.msk.f32.mxu1 %vm411_vm1, %v5701_v1 }
  0xef   : > { %4829 = vmatprep.mubr.msk.f32.mxu0 %vm411_vm1, %v7236_v44  ;;  %v6708_v44 = vld [vmem:[%s7030_s4] ss:$0 sm:$0xff] }
  0xf1   : > { %4570 = vmatmul.mubr.msk.f32.gmra.mrb[8].mxu1 %vm411_vm1, %v5704_v2  ;;  %v2738_v2 = vsel %vm990_vm2, %v2736_v36, %v2737_v42 }
  0xf2   : > { %4830 = vmatmul.mubr.msk.f32.gmra.mrb[8].mxu0 %vm411_vm1, %v7238_v25  ;;  %4572 = vmatprep.mubr.msk.f32.mxu1 %vm411_vm1, %v5733_v14  ;;  %v7279_v14 = vld [vmem:[#allocation60_spill] sm:$0xff]  ;;  %v7281_v25 = vld [vmem:[#allocation5_spill] sm:$0xff] }
  0xf3   : > { %4832 = vmatprep.mubr.msk.f32.mxu0 %vm411_vm1, %v7240_v19  ;;  %v7280_v19 = vld [vmem:[#allocation61_spill] sm:$0xff] }
  0xf5   : > { %4573 = vmatmul.mubr.msk.f32.gmra.mrb[10].mxu1 %vm411_vm1, %v5736_v15 }
  0xf6   : > { %4833 = vmatmul.mubr.msk.f32.gmra.mrb[10].mxu0 %vm411_vm1, %v7242_v7  ;;  %4575 = vmatprep.mubr.msk.f32.mxu1 %vm411_vm1, %v5764_v38  ;;  %v7278_v7 = vld [vmem:[#allocation69_spill] sm:$0xff]  ;;  %v7282_v38 = vld [vmem:[#allocation6_spill] sm:$0xff] }
  0xf7   : > { %4835 = vmatprep.mubr.msk.f32.mxu0 %vm411_vm1, %v7244_v3  ;;  %v7277_v3 = vld [vmem:[#allocation55_spill] sm:$0xff] }
  0xf9   : > { %4576 = vmatmul.mubr.msk.f32.gmra.mrb[12].mxu1 %vm411_vm1, %v5767_v39  ;;  %v7283_v39 = vld [vmem:[#allocation8_spill] sm:$0xff] }
  0xfa   : > { %4836 = vmatmul.mubr.msk.f32.gmra.mrb[12].mxu0 %vm411_vm1, %v7246_v59  ;;  %4578 = vmatprep.mubr.msk.f32.mxu1 %vm411_vm1, %v5795_v60  ;;  %v7276_v59 = vld [vmem:[#allocation68_spill] sm:$0xff]  ;;  %v7284_v60 = vld [vmem:[#allocation10_spill] sm:$0xff] }
  0xfb   : > { %4838 = vmatprep.mubr.msk.f32.mxu0 %vm411_vm1, %v7248_v4  ;;  %v2739_v1 = vrot.slane %v7276_v59, 2 }
  0xfd   : > { %4579 = vmatmul.mubr.msk.f32.gmra.mrb[14].mxu1 %vm411_vm1, %v5798_v61  ;;  %v2740_v15 = vsel %vm990_vm2, %v2737_v42, %v2739_v1  ;;  %v7285_v61 = vld [vmem:[#allocation12_spill] sm:$0xff] }
  0xfe   : > { %4839 = vmatmul.mubr.msk.f32.gmra.mrb[14].mxu0 %vm411_vm1, %v7250_v11  ;;  %4581 = vmatprep.mubr.msk.f32.mxu1 %vm411_vm1, %v5826_v27  ;;  %v7286_v27 = vld [vmem:[#allocation14_spill] sm:$0xff] }
  0xff   : > { %4841 = vmatprep.mubr.msk.f32.mxu0 %vm411_vm1, %v7252_v9  ;;  %v7301_v11 = vld [vmem:[#allocation46_spill] sm:$0xff] }
 0x101   : > { %4582 = vmatmul.mubr.msk.f32.gmra.mrb[16].mxu1 %vm411_vm1, %v5829_v28  ;;  %v7287_v28 = vld [vmem:[#allocation16_spill] sm:$0xff] }
 0x102   : > { %4842 = vmatmul.mubr.msk.f32.gmra.mrb[16].mxu0 %vm411_vm1, %v7254_v52  ;;  %4584 = vmatprep.mubr.msk.f32.mxu1 %vm411_vm1, %v5857_v57  ;;  %v7288_v57 = vld [vmem:[#allocation18_spill] sm:$0xff] }
 0x103   : > { %4844 = vmatprep.mubr.msk.f32.mxu0 %vm411_vm1, %v7256_v5  ;;  %v7300_v5 = vld [vmem:[#allocation44_spill] sm:$0xff]  ;;  %v7302_v52 = vld [vmem:[#allocation50_spill] sm:$0xff] }
 0x105   : > { %4585 = vmatmul.mubr.msk.f32.gmra.mrb[18].mxu1 %vm411_vm1, %v5860_v8  ;;  %v7289_v8 = vld [vmem:[#allocation20_spill] sm:$0xff] }
 0x106   : > { %4845 = vmatmul.mubr.msk.f32.gmra.mrb[18].mxu0 %vm411_vm1, %v7258_v45  ;;  %4587 = vmatprep.mubr.msk.f32.mxu1 %vm411_vm1, %v5888_v12  ;;  %v7290_v12 = vld [vmem:[#allocation22_spill] sm:$0xff] }
 0x107   : > { %4847 = vmatprep.mubr.msk.f32.mxu0 %vm411_vm1, %v7260_v30  ;;  %v7297_v30 = vld [vmem:[#allocation36_spill] sm:$0xff]  ;;  %v7298_v45 = vld [vmem:[#allocation38_spill] sm:$0xff] }
 0x109   : > { %4588 = vmatmul.mubr.msk.f32.gmra.mrb[20].mxu1 %vm411_vm1, %v5891_v32  ;;  %v7291_v32 = vld [vmem:[#allocation24_spill] sm:$0xff] }
 0x10a   : > { %4848 = vmatmul.mubr.msk.f32.gmra.mrb[20].mxu0 %vm411_vm1, %v7262_v22  ;;  %4590 = vmatprep.mubr.msk.f32.mxu1 %vm411_vm1, %v5919_v0  ;;  %v7292_v0 = vld [vmem:[#allocation26_spill] sm:$0xff]  ;;  %v7295_v22 = vld [vmem:[#allocation32_spill] sm:$0xff] }
 0x10b   : > { %4850 = vmatprep.mubr.msk.f32.mxu0 %vm411_vm1, %v7263_v24 }
 0x10d   : > { %4591 = vmatmul.mubr.msk.f32.gmra.mrb[22].mxu1 %vm411_vm1, %v5922_v41  ;;  %v7293_v41 = vld [vmem:[#allocation28_spill] sm:$0xff] }
 0x10e   : > { %4851 = vmatmul.mubr.msk.f32.gmra.mrb[22].mxu0 %vm411_vm1, %v7265_v62  ;;  %4593 = vmatprep.mubr.msk.f32.mxu1 %vm411_vm1, %v7269_v18  ;;  %v7303_v62 = vld [vmem:[#allocation52_spill] sm:$0xff] }
 0x10f   : > { %4853 = vmatprep.mubr.msk.f32.mxu0 %vm411_vm1, %v7266_v55  ;;  %v7305_v55 = vld [vmem:[#allocation58_spill] sm:$0xff] }
 0x111   : > { %4594 = vmatmul.mubr.msk.f32.gmra.mrb[24].mxu1 %vm411_vm1, %v7270_v21 }
 0x112   : > { %4854 = vmatmul.mubr.msk.f32.gmra.mrb[24].mxu0 %vm411_vm1, %v7268_v13  ;;  %4596 = vmatprep.mubr.msk.f32.mxu1 %vm411_vm1, %v7271_v33  ;;  %v7304_v13 = vld [vmem:[#allocation56_spill] sm:$0xff] }
 0x113   : > { %4856 = vmatprep.mubr.msk.f32.mxu0 %vm411_vm1, %v6066_v56  ;;  %v7299_v56 = vld [vmem:[#allocation40_spill] sm:$0xff] }
 0x115   : > { %4597 = vmatmul.mubr.msk.f32.gmra.mrb[26].mxu1 %vm411_vm1, %v7273_v48 }
 0x116   : > { %4857 = vmatmul.mubr.msk.f32.gmra.mrb[26].mxu0 %vm411_vm1, %v6084_v10  ;;  %4599 = vmatprep.mubr.msk.f32.mxu1 %vm411_vm1, %v7274_v49  ;;  %v7307_v10 = vld [vmem:[#allocation64_spill] sm:$0xff] }
 0x117   : > { %4859 = vmatprep.mubr.msk.f32.mxu0 %vm411_vm1, %v7275_v53 }
 0x119   : > { %4600 = vmatmul.mubr.msk.f32.gmra.mrb[28].mxu1 %vm411_vm1, %v7277_v3 }
 0x11a   : > { %4860 = vmatmul.mubr.msk.f32.gmra.mrb[28].mxu0 %vm411_vm1, %v7278_v7  ;;  %4602 = vmatprep.mubr.msk.f32.mxu1 %vm411_vm1, %v7279_v14 }
 0x11b   : > { %4862 = vmatprep.mubr.msk.f32.mxu0 %vm411_vm1, %v2738_v2 }
 0x11d   : > { %4603 = vmatmul.mubr.msk.f32.gmra.mrb[30].mxu1 %vm411_vm1, %v7280_v19 }
 0x11e   : > { %4863 = vmatmul.mubr.msk.f32.gmra.mrb[30].mxu0 %vm411_vm1, %v2740_v15  ;;  %4609 = vmatprep.mubr.msk.f32.mxu1 %vm411_vm1, %v7281_v25 }
 0x11f   : > { %4869 = vmatprep.mubr.msk.f32.mxu0 %vm411_vm1, %v7281_v25 }
 0x121   : > { %4610 = vmatmul.mubr.msk.f32.vlgmr.msra.gmra.mrb[0].mxu1 %vm411_vm1, %v7282_v38 }
 0x122   : > { %4870 = vmatmul.mubr.msk.f32.vlgmr.msra.gmra.mrb[0].mxu0 %vm411_vm1, %v7282_v38  ;;  %4612 = vmatprep.mubr.msk.f32.mxu1 %vm411_vm1, %v7283_v39 }
 0x123   : > { %4872 = vmatprep.mubr.msk.f32.mxu0 %vm411_vm1, %v7283_v39 }
 0x125   : > { %4613 = vmatmul.mubr.msk.f32.gmra.mrb[2].mxu1 %vm411_vm1, %v7284_v60 }
 0x126   : > { %4873 = vmatmul.mubr.msk.f32.gmra.mrb[2].mxu0 %vm411_vm1, %v7284_v60  ;;  %4615 = vmatprep.mubr.msk.f32.mxu1 %vm411_vm1, %v7285_v61 }
 0x127   : > { %4875 = vmatprep.mubr.msk.f32.mxu0 %vm411_vm1, %v7285_v61 }
 0x129   : > { %4616 = vmatmul.mubr.msk.f32.gmra.mrb[4].mxu1 %vm411_vm1, %v7286_v27 }
 0x12a   : > { %4876 = vmatmul.mubr.msk.f32.gmra.mrb[4].mxu0 %vm411_vm1, %v7286_v27  ;;  %4618 = vmatprep.mubr.msk.f32.mxu1 %vm411_vm1, %v7287_v28 }
 0x12b   : > { %4878 = vmatprep.mubr.msk.f32.mxu0 %vm411_vm1, %v7287_v28 }
 0x12d   : > { %4619 = vmatmul.mubr.msk.f32.gmra.mrb[6].mxu1 %vm411_vm1, %v7288_v57 }
 0x12e   : > { %4879 = vmatmul.mubr.msk.f32.gmra.mrb[6].mxu0 %vm411_vm1, %v7288_v57  ;;  %4621 = vmatprep.mubr.msk.f32.mxu1 %vm411_vm1, %v7289_v8 }
 0x12f   : > { %4881 = vmatprep.mubr.msk.f32.mxu0 %vm411_vm1, %v7289_v8 }
 0x131   : > { %4622 = vmatmul.mubr.msk.f32.gmra.mrb[8].mxu1 %vm411_vm1, %v7290_v12 }
 0x132   : > { %4882 = vmatmul.mubr.msk.f32.gmra.mrb[8].mxu0 %vm411_vm1, %v7290_v12  ;;  %4624 = vmatprep.mubr.msk.f32.mxu1 %vm411_vm1, %v7291_v32 }
 0x133   : > { %4884 = vmatprep.mubr.msk.f32.mxu0 %vm411_vm1, %v7291_v32 }
 0x135   : > { %4625 = vmatmul.mubr.msk.f32.gmra.mrb[10].mxu1 %vm411_vm1, %v7292_v0 }
 0x136   : > { %4885 = vmatmul.mubr.msk.f32.gmra.mrb[10].mxu0 %vm411_vm1, %v7292_v0  ;;  %4627 = vmatprep.mubr.msk.f32.mxu1 %vm411_vm1, %v7293_v41 }
 0x137   : > { %4887 = vmatprep.mubr.msk.f32.mxu0 %vm411_vm1, %v7293_v41 }
 0x139   : > { %4628 = vmatmul.mubr.msk.f32.gmra.mrb[12].mxu1 %vm411_vm1, %v7294_v47 }
 0x13a   : > { %4888 = vmatmul.mubr.msk.f32.gmra.mrb[12].mxu0 %vm411_vm1, %v7294_v47  ;;  %4630 = vmatprep.mubr.msk.f32.mxu1 %vm411_vm1, %v7295_v22 }
 0x13b   : > { %4890 = vmatprep.mubr.msk.f32.mxu0 %vm411_vm1, %v7295_v22 }
 0x13d   : > { %4631 = vmatmul.mubr.msk.f32.gmra.mrb[14].mxu1 %vm411_vm1, %v7296_v51 }
 0x13e   : > { %4891 = vmatmul.mubr.msk.f32.gmra.mrb[14].mxu0 %vm411_vm1, %v7296_v51  ;;  %4633 = vmatprep.mubr.msk.f32.mxu1 %vm411_vm1, %v7297_v30 }
 0x13f   : > { %4893 = vmatprep.mubr.msk.f32.mxu0 %vm411_vm1, %v7297_v30 }
 0x141   : > { %4634 = vmatmul.mubr.msk.f32.gmra.mrb[16].mxu1 %vm411_vm1, %v7298_v45 }
 0x142   : > { %4894 = vmatmul.mubr.msk.f32.gmra.mrb[16].mxu0 %vm411_vm1, %v7298_v45  ;;  %4636 = vmatprep.mubr.msk.f32.mxu1 %vm411_vm1, %v7299_v56 }
 0x143   : > { %4896 = vmatprep.mubr.msk.f32.mxu0 %vm411_vm1, %v7299_v56 }
 0x145   : > { %4637 = vmatmul.mubr.msk.f32.gmra.mrb[18].mxu1 %vm411_vm1, %v7300_v5 }
 0x146   : > { %4897 = vmatmul.mubr.msk.f32.gmra.mrb[18].mxu0 %vm411_vm1, %v7300_v5  ;;  %4639 = vmatprep.mubr.msk.f32.mxu1 %vm411_vm1, %v7301_v11 }
 0x147   : > { %4899 = vmatprep.mubr.msk.f32.mxu0 %vm411_vm1, %v7301_v11 }
 0x149   : > { %4640 = vmatmul.mubr.msk.f32.gmra.mrb[20].mxu1 %vm411_vm1, %v7302_v52 }
 0x14a   : > { %4900 = vmatmul.mubr.msk.f32.gmra.mrb[20].mxu0 %vm411_vm1, %v7302_v52  ;;  %4642 = vmatprep.mubr.msk.f32.mxu1 %vm411_vm1, %v7303_v62 }
 0x14b   : > { %4902 = vmatprep.mubr.msk.f32.mxu0 %vm411_vm1, %v7303_v62 }
 0x14d   : > { %4643 = vmatmul.mubr.msk.f32.gmra.mrb[22].mxu1 %vm411_vm1, %v7304_v13 }
 0x14e   : > { %4903 = vmatmul.mubr.msk.f32.gmra.mrb[22].mxu0 %vm411_vm1, %v7304_v13  ;;  %4645 = vmatprep.mubr.msk.f32.mxu1 %vm411_vm1, %v7305_v55 }
 0x14f   : > { %4905 = vmatprep.mubr.msk.f32.mxu0 %vm411_vm1, %v7305_v55 }
 0x151   : > { %4646 = vmatmul.mubr.msk.f32.gmra.mrb[24].mxu1 %vm411_vm1, %v7306_v31 }
 0x152   : > { %4906 = vmatmul.mubr.msk.f32.gmra.mrb[24].mxu0 %vm411_vm1, %v7306_v31  ;;  %4648 = vmatprep.mubr.msk.f32.mxu1 %vm411_vm1, %v7307_v10 }
 0x153   : > { %4908 = vmatprep.mubr.msk.f32.mxu0 %vm411_vm1, %v7307_v10 }
 0x155   : > { %4649 = vmatmul.mubr.msk.f32.gmra.mrb[26].mxu1 %vm411_vm1, %v7308_v63 }
 0x156   : > { %4909 = vmatmul.mubr.msk.f32.gmra.mrb[26].mxu0 %vm411_vm1, %v7308_v63  ;;  %4651 = vmatprep.mubr.msk.f32.mxu1 %vm411_vm1, %v7309_v58 }
 0x157   : > { %4911 = vmatprep.mubr.msk.f32.mxu0 %vm411_vm1, %v7309_v58 }
 0x159   : > { %4652 = vmatmul.mubr.msk.f32.gmra.mrb[28].mxu1 %vm411_vm1, %v6108_v54 }
 0x15a   : > { %4912 = vmatmul.mubr.msk.f32.gmra.mrb[28].mxu0 %vm411_vm1, %v6108_v54  ;;  %4654 = vmatprep.mubr.msk.f32.mxu1 %vm411_vm1, %v6415_v17 }
 0x15b   : > { %4914 = vmatprep.mubr.msk.f32.mxu0 %vm411_vm1, %v6415_v17 }
 0x15d   : > { %4655 = vmatmul.mubr.msk.f32.gmra.mrb[30].mxu1 %vm411_vm1, %v6101_v40 }
 0x15e   : > { %4915 = vmatmul.mubr.msk.f32.gmra.mrb[30].mxu0 %vm411_vm1, %v6101_v40 }
 0x1f4   : > { %v4611_v9 = vpop.f32.mrb[0].mxu1 }
 0x1f5   : > { %v4871_v4 = vpop.f32.mrb[0].mxu0  ;;  %v1740_v54 = vpop.f32.mrb[1].mxu1 }
 0x1f6   : > { %v4957_v6 = vadd.f32 %v4871_v4, %v4611_v9  ;;  %v3073_v37 = vpop.f32.mrb[1].mxu0 }
 0x1f7   : > { %v4958_v46 = vadd.f32 %v3073_v37, %v1740_v54 }
 0x1f8   : > { %v3272_v43 = vmul.f32 %v4957_v6, %v6703_v50  ;;  %v4614_v29 = vpop.f32.mrb[2].mxu1 }
 0x1f9   : > { %v3271_v40 = vmul.f32 %v4958_v46, %v6703_v50  ;;  %v4874_v35 = vpop.f32.mrb[2].mxu0  ;;  %v1750_v16 = vpop.f32.mrb[3].mxu1 }
 0x1fa   : > { %v6713_v17 = vadd.f32 %v6708_v44, %v3272_v43  ;;  %v4959_v23 = vadd.f32 %v4874_v35, %v4614_v29  ;;  %v3083_v20 = vpop.f32.mrb[3].mxu0 }
 0x1fb   : > { %v6716_v26 = vadd.f32 %v6708_v44, %v3271_v40  ;;  %v4960_v24 = vadd.f32 %v3083_v20, %v1750_v16 }
 0x1fc   : > { %v4020_v18 = vmul.f32 -1.442695, %v6713_v17  ;;  %v3274_v21 = vmul.f32 %v4959_v23, %v6703_v50  ;;  %v4617_v33 = vpop.f32.mrb[4].mxu1 }
 0x1fd   : > { %v4019_v34 = vmul.f32 -1.442695, %v6716_v26  ;;  %v3273_v36 = vmul.f32 %v4960_v24, %v6703_v50  ;;  %v4877_v42 = vpop.f32.mrb[4].mxu0  ;;  %v1760_v48 = vpop.f32.mrb[5].mxu1 }
 0x1fe   : > { %5287 = vpow2.f32 %v4020_v18  ;;  %v6723_v49 = vadd.f32 %v6708_v44, %v3274_v21  ;;  %v4961_v53 = vadd.f32 %v4877_v42, %v4617_v33  ;;  %v3093_v59 = vpop.f32.mrb[5].mxu0 }
 0x1ff   : > { %5289 = vpow2.f32 %v4019_v34  ;;  %v6726_v1 = vadd.f32 %v6708_v44, %v3273_v36  ;;  %v4962_v2 = vadd.f32 %v3093_v59, %v1760_v48 }
 0x200   : > { %v4022_v3 = vmul.f32 -1.442695, %v6723_v49  ;;  %v3276_v7 = vmul.f32 %v4961_v53, %v6703_v50  ;;  %v4620_v14 = vpop.f32.mrb[6].mxu1 }
 0x201   : > { %v4021_v15 = vmul.f32 -1.442695, %v6726_v1  ;;  %v3275_v19 = vmul.f32 %v4962_v2, %v6703_v50  ;;  %v4880_v25 = vpop.f32.mrb[6].mxu0  ;;  %v1770_v38 = vpop.f32.mrb[7].mxu1 }
 0x202   : > { %5291 = vpow2.f32 %v4022_v3  ;;  %v6733_v39 = vadd.f32 %v6708_v44, %v3276_v7  ;;  %v4963_v60 = vadd.f32 %v4880_v25, %v4620_v14  ;;  %v3103_v61 = vpop.f32.mrb[7].mxu0 }
 0x203   : > { %5293 = vpow2.f32 %v4021_v15  ;;  %v6736_v27 = vadd.f32 %v6708_v44, %v3275_v19  ;;  %v4964_v28 = vadd.f32 %v3103_v61, %v1770_v38 }
 0x204   : > { %v4024_v57 = vmul.f32 -1.442695, %v6733_v39  ;;  %v3278_v8 = vmul.f32 %v4963_v60, %v6703_v50  ;;  %v4623_v12 = vpop.f32.mrb[8].mxu1 }
 0x205   : > { %v4023_v32 = vmul.f32 -1.442695, %v6736_v27  ;;  %v3277_v0 = vmul.f32 %v4964_v28, %v6703_v50  ;;  %v4883_v41 = vpop.f32.mrb[8].mxu0  ;;  %v1780_v47 = vpop.f32.mrb[9].mxu1 }
 0x206   : > { %5295 = vpow2.f32 %v4024_v57  ;;  %v6743_v22 = vadd.f32 %v6708_v44, %v3278_v8  ;;  %v4965_v51 = vadd.f32 %v4883_v41, %v4623_v12  ;;  %v3113_v30 = vpop.f32.mrb[9].mxu0 }
 0x207   : > { %5297 = vpow2.f32 %v4023_v32  ;;  %v6746_v45 = vadd.f32 %v6708_v44, %v3277_v0  ;;  %v4966_v56 = vadd.f32 %v3113_v30, %v1780_v47 }
 0x208   : > { %v5288_v5 = vpop.eup %5287  ;;  %v4026_v11 = vmul.f32 -1.442695, %v6743_v22  ;;  %v3280_v52 = vmul.f32 %v4965_v51, %v6703_v50  ;;  %v4626_v62 = vpop.f32.mrb[10].mxu1 }
 0x209   : > { %v5290_v13 = vpop.eup %5289  ;;  %v3439_v55 = vadd.f32 1.0, %v5288_v5  ;;  %v4025_v31 = vmul.f32 -1.442695, %v6746_v45  ;;  %v3279_v10 = vmul.f32 %v4966_v56, %v6703_v50  ;;  %v4886_v63 = vpop.f32.mrb[10].mxu0 }
 0x20a   : > { %v1790_v58 = vpop.f32.mrb[11].mxu1  ;;  %v3438_v9 = vadd.f32 1.0, %v5290_v13  ;;  %5299 = vpow2.f32 %v4026_v11  ;;  %v6753_v4 = vadd.f32 %v6708_v44, %v3280_v52  ;;  %v4967_v54 = vadd.f32 %v4886_v63, %v4626_v62  ;;  %v3123_v6 = vpop.f32.mrb[11].mxu0 }
 0x20b   : > { %5301 = vrcp.f32 %v3439_v55  ;;  %v6756_v37 = vadd.f32 %v6708_v44, %v3279_v10  ;;  %v4968_v46 = vadd.f32 %v3123_v6, %v1790_v58 }
 0x20c   : > { %v5292_v43 = vpop.eup %5291  ;;  %5303 = vrcp.f32 %v3438_v9  ;;  %v4028_v29 = vmul.f32 -1.442695, %v6753_v4  ;;  %v3282_v40 = vmul.f32 %v4967_v54, %v6703_v50  ;;  %v4629_v35 = vpop.f32.mrb[12].mxu1 }
 0x20d   : > { %v5294_v16 = vpop.eup %5293  ;;  %v3441_v23 = vadd.f32 1.0, %v5292_v43  ;;  %5305 = vpow2.f32 %v4025_v31  ;;  %v4027_v20 = vmul.f32 -1.442695, %v6756_v37  ;;  %v3281_v24 = vmul.f32 %v4968_v46, %v6703_v50  ;;  %v4889_v18 = vpop.f32.mrb[12].mxu0 }
 0x20e   : > { %v1800_v21 = vpop.f32.mrb[13].mxu1  ;;  %v3440_v33 = vadd.f32 1.0, %v5294_v16  ;;  %5307 = vpow2.f32 %v4028_v29  ;;  %v6763_v34 = vadd.f32 %v6708_v44, %v3282_v40  ;;  %v4969_v36 = vadd.f32 %v4889_v18, %v4629_v35  ;;  %v3133_v42 = vpop.f32.mrb[13].mxu0 }
 0x20f   : > { %5309 = vrcp.f32 %v3441_v23  ;;  %v6767_v48 = vadd.f32 %v6708_v44, %v3281_v24  ;;  %v4970_v53 = vadd.f32 %v3133_v42, %v1800_v21 }
 0x210   : > { %v5296_v59 = vpop.eup %5295  ;;  %5311 = vrcp.f32 %v3440_v33  ;;  %v4030_v2 = vmul.f32 -1.442695, %v6763_v34  ;;  %v3284_v3 = vmul.f32 %v4969_v36, %v6703_v50  ;;  %v4632_v7 = vpop.f32.mrb[14].mxu1 }
 0x211   : > { %v5298_v14 = vpop.eup %5297  ;;  %v3443_v15 = vadd.f32 1.0, %v5296_v59  ;;  %5313 = vpow2.f32 %v4027_v20  ;;  %v4029_v19 = vmul.f32 -1.442695, %v6767_v48  ;;  %v3283_v25 = vmul.f32 %v4970_v53, %v6703_v50  ;;  %v4892_v38 = vpop.f32.mrb[14].mxu0 }
 0x212   : > { %v1810_v60 = vpop.f32.mrb[15].mxu1  ;;  %v3442_v61 = vadd.f32 1.0, %v5298_v14  ;;  %5315 = vpow2.f32 %v4030_v2  ;;  %v6778_v28 = vadd.f32 %v6708_v44, %v3284_v3  ;;  %v4971_v57 = vadd.f32 %v4892_v38, %v4632_v7  ;;  %v3143_v8 = vpop.f32.mrb[15].mxu0 }
 0x213   : > { %5317 = vrcp.f32 %v3443_v15  ;;  %v6781_v12 = vadd.f32 %v6708_v44, %v3283_v25  ;;  %v4972_v32 = vadd.f32 %v3143_v8, %v1810_v60 }
 0x214   : > { %v5300_v0 = vpop.eup %5299  ;;  %5319 = vrcp.f32 %v3442_v61  ;;  %v4032_v41 = vmul.f32 -1.442695, %v6778_v28  ;;  %v3286_v47 = vmul.f32 %v4971_v57, %v6703_v50  ;;  %v4635_v51 = vpop.f32.mrb[16].mxu1 }
 0x215   : > { %v5302_v30 = vpop.eup %5301  ;;  %v3445_v56 = vadd.f32 1.0, %v5300_v0  ;;  %5321 = vpow2.f32 %v4029_v19  ;;  %v4031_v5 = vmul.f32 -1.442695, %v6781_v12  ;;  %v3285_v11 = vmul.f32 %v4972_v32, %v6703_v50  ;;  %v4895_v52 = vpop.f32.mrb[16].mxu0 }
 0x216   : > { %v1820_v62 = vpop.f32.mrb[17].mxu1  ;;  %v5304_v13 = vpop.eup %5303  ;;  %v3535_v55 = vmul.f32 %v5302_v30, %v6713_v17  ;;  %5323 = vpow2.f32 %v4032_v41  ;;  %v6789_v31 = vadd.f32 %v6708_v44, %v3286_v47  ;;  %v4973_v10 = vadd.f32 %v4895_v52, %v4635_v51 }
 0x217   : > { %v3153_v63 = vpop.f32.mrb[17].mxu0  ;;  %v5306_v58 = vpop.eup %5305  ;;  %v3534_v9 = vmul.f32 %v5304_v13, %v6716_v26  ;;  %5325 = vrcp.f32 %v3445_v56  ;;  %v6793_v54 = vadd.f32 %v6708_v44, %v3285_v11 }
 0x218   : > { %v4974_v6 = vadd.f32 %v3153_v63, %v1820_v62  ;;  %v5308_v46 = vpop.eup %5307  ;;  %3568 = vst.msk [vmem:[%s6796_s8 + $0x8] sm:$0xff] %vm3566_vm3, %v3535_v55  ;;  %v3444_v17 = vadd.f32 1.0, %v5306_v58  ;;  %5327 = vpow2.f32 %v4031_v5  ;;  %v4034_v43 = vmul.f32 -1.442695, %v6789_v31  ;;  %v4638_v40 = vpop.f32.mrb[18].mxu1 }
 0x219   : > { %v3288_v29 = vmul.f32 %v4973_v10, %v6703_v50  ;;  %v5310_v26 = vpop.eup %5309  ;;  %3567 = vst.msk [vmem:[%s6796_s8] sm:$0xff] %vm3566_vm3, %v3534_v9  ;;  %v3447_v35 = vadd.f32 1.0, %v5308_v46  ;;  %v4033_v16 = vmul.f32 -1.442695, %v6793_v54  ;;  %v4898_v20 = vpop.f32.mrb[18].mxu0 }
 0x21a   : > { %v3287_v23 = vmul.f32 %v4974_v6, %v6703_v50  ;;  %v1830_v24 = vpop.f32.mrb[19].mxu1  ;;  %v5312_v18 = vpop.eup %5311  ;;  %v3537_v21 = vmul.f32 %v5310_v26, %v6723_v49  ;;  %5329 = vrcp.f32 %v3444_v17  ;;  %v4975_v36 = vadd.f32 %v4898_v20, %v4638_v40 }
 0x21b   : > { %v6808_v33 = vadd.f32 %v6708_v44, %v3288_v29  ;;  %v3163_v42 = vpop.f32.mrb[19].mxu0  ;;  %v5314_v53 = vpop.eup %5313  ;;  %v3536_v59 = vmul.f32 %v5312_v18, %v6726_v1  ;;  %5331 = vrcp.f32 %v3447_v35 }
 0x21c   : > { %v6812_v2 = vadd.f32 %v6708_v44, %v3287_v23  ;;  %v4976_v3 = vadd.f32 %v3163_v42, %v1830_v24  ;;  %v5316_v7 = vpop.eup %5315  ;;  %3570 = vst.msk [vmem:[%s6796_s8 + $0x18] sm:$0xff] %vm3566_vm3, %v3537_v21  ;;  %v3446_v14 = vadd.f32 1.0, %v5314_v53  ;;  %5333 = vpow2.f32 %v4034_v43  ;;  %v4641_v19 = vpop.f32.mrb[20].mxu1 }
 0x21d   : > { %v4036_v49 = vmul.f32 -1.442695, %v6808_v33  ;;  %v3290_v15 = vmul.f32 %v4975_v36, %v6703_v50  ;;  %v5318_v25 = vpop.eup %5317  ;;  %3569 = vst.msk [vmem:[%s6796_s8 + $0x10] sm:$0xff] %vm3566_vm3, %v3536_v59  ;;  %v3449_v38 = vadd.f32 1.0, %v5316_v7  ;;  %5335 = vpow2.f32 %v4033_v16  ;;  %v4901_v61 = vpop.f32.mrb[20].mxu0 }
 0x21e   : > { %v4035_v1 = vmul.f32 -1.442695, %v6812_v2  ;;  %v3289_v60 = vmul.f32 %v4976_v3, %v6703_v50  ;;  %v1840_v57 = vpop.f32.mrb[21].mxu1  ;;  %v5320_v8 = vpop.eup %5319  ;;  %v3539_v32 = vmul.f32 %v5318_v25, %v6733_v39  ;;  %5337 = vrcp.f32 %v3446_v14 }
 0x21f   : > { %v6824_v0 = vadd.f32 %v6708_v44, %v3290_v15  ;;  %v4977_v41 = vadd.f32 %v4901_v61, %v4641_v19  ;;  %v3173_v47 = vpop.f32.mrb[21].mxu0  ;;  %v5322_v51 = vpop.eup %5321  ;;  %v3538_v30 = vmul.f32 %v5320_v8, %v6736_v27  ;;  %5339 = vrcp.f32 %v3449_v38 }
 0x220   : > { %v6828_v56 = vadd.f32 %v6708_v44, %v3289_v60  ;;  %v4978_v5 = vadd.f32 %v3173_v47, %v1840_v57  ;;  %v5324_v11 = vpop.eup %5323  ;;  %3572 = vst.msk [vmem:[%s6796_s8 + $0x28] sm:$0xff] %vm3566_vm3, %v3539_v32  ;;  %v3448_v52 = vadd.f32 1.0, %v5322_v51  ;;  %5341 = vpow2.f32 %v4036_v49  ;;  %v4644_v13 = vpop.f32.mrb[22].mxu1 }
 0x221   : > { %v4038_v39 = vmul.f32 -1.442695, %v6824_v0  ;;  %v3292_v62 = vmul.f32 %v4977_v41, %v6703_v50  ;;  %v5326_v55 = vpop.eup %5325  ;;  %3571 = vst.msk [vmem:[%s6796_s8 + $0x20] sm:$0xff] %vm3566_vm3, %v3538_v30  ;;  %v3451_v10 = vadd.f32 1.0, %v5324_v11  ;;  %5343 = vpow2.f32 %v4035_v1  ;;  %v4904_v58 = vpop.f32.mrb[22].mxu0 }
 0x222   : > { %v4037_v27 = vmul.f32 -1.442695, %v6828_v56  ;;  %v3291_v63 = vmul.f32 %v4978_v5, %v6703_v50  ;;  %v1850_v9 = vpop.f32.mrb[23].mxu1  ;;  %v5328_v6 = vpop.eup %5327  ;;  %v3541_v46 = vmul.f32 %v5326_v55, %v6743_v22  ;;  %5345 = vrcp.f32 %v3448_v52 }
 0x223   : > { %v6840_v17 = vadd.f32 %v6708_v44, %v3292_v62  ;;  %v4979_v43 = vadd.f32 %v4904_v58, %v4644_v13  ;;  %v3183_v29 = vpop.f32.mrb[23].mxu0  ;;  %5347 = vrcp.f32 %v3451_v10  ;;  %v3450_v40 = vadd.f32 1.0, %v5328_v6 }
 0x224   : > { %v6843_v26 = vadd.f32 %v6708_v44, %v3291_v63  ;;  %v4980_v35 = vadd.f32 %v3183_v29, %v1850_v9  ;;  %v5330_v16 = vpop.eup %5329  ;;  %3574 = vst.msk [vmem:[%s6796_s8 + $0x38] sm:$0xff] %vm3566_vm3, %v3541_v46  ;;  %5349 = vpow2.f32 %v4038_v39  ;;  %v4647_v20 = vpop.f32.mrb[24].mxu1 }
 0x225   : > { %v4040_v23 = vmul.f32 -1.442695, %v6840_v17  ;;  %v3294_v22 = vmul.f32 %v4979_v43, %v6703_v50  ;;  %v5332_v24 = vpop.eup %5331  ;;  %v3540_v18 = vmul.f32 %v5330_v16, %v6746_v45  ;;  %5351 = vrcp.f32 %v3450_v40  ;;  %v4907_v42 = vpop.f32.mrb[24].mxu0 }
 0x226   : > { %v4039_v21 = vmul.f32 -1.442695, %v6843_v26  ;;  %v3293_v36 = vmul.f32 %v4980_v35, %v6703_v50  ;;  %v1860_v53 = vpop.f32.mrb[25].mxu1  ;;  %v5334_v59 = vpop.eup %5333  ;;  %v3543_v3 = vmul.f32 %v5332_v24, %v6753_v4  ;;  %5353 = vpow2.f32 %v4037_v27 }
 0x227   : > { %v6854_v7 = vadd.f32 %v6708_v44, %v3294_v22  ;;  %v4981_v14 = vadd.f32 %v4907_v42, %v4647_v20  ;;  %v3193_v49 = vpop.f32.mrb[25].mxu0  ;;  %v5336_v15 = vpop.eup %5335  ;;  %3573 = vst.msk [vmem:[%s6796_s8 + $0x30] sm:$0xff] %vm3566_vm3, %v3540_v18  ;;  %v3453_v45 = vadd.f32 1.0, %v5334_v59  ;;  %5355 = vpow2.f32 %v4040_v23 }
 0x228   : > { %v6859_v19 = vadd.f32 %v6708_v44, %v3293_v36  ;;  %v4982_v25 = vadd.f32 %v3193_v49, %v1860_v53  ;;  %v5338_v38 = vpop.eup %5337  ;;  %3576 = vst.msk [vmem:[%s6796_s8 + $0x48] sm:$0xff] %vm3566_vm3, %v3543_v3  ;;  %v3452_v1 = vadd.f32 1.0, %v5336_v15  ;;  %5357 = vpow2.f32 %v4039_v21  ;;  %v4650_v61 = vpop.f32.mrb[26].mxu1 }
 0x229   : > { %v4042_v4 = vmul.f32 -1.442695, %v6854_v7  ;;  %v3296_v60 = vmul.f32 %v4981_v14, %v6703_v50  ;;  %v5340_v57 = vpop.eup %5339  ;;  %v3542_v8 = vmul.f32 %v5338_v38, %v6756_v37  ;;  %5359 = vrcp.f32 %v3453_v45  ;;  %v4910_v47 = vpop.f32.mrb[26].mxu0 }
 0x22a   : > { %v4041_v32 = vmul.f32 -1.442695, %v6859_v19  ;;  %v3295_v41 = vmul.f32 %v4982_v25, %v6703_v50  ;;  %v1870_v51 = vpop.f32.mrb[27].mxu1  ;;  %v5342_v30 = vpop.eup %5341  ;;  %v3545_v5 = vmul.f32 %v5340_v57, %v6763_v34  ;;  %5361 = vrcp.f32 %v3452_v1 }
 0x22b   : > { %v6870_v11 = vadd.f32 %v6708_v44, %v3296_v60  ;;  %v4983_v52 = vadd.f32 %v4910_v47, %v4650_v61  ;;  %v3203_v39 = vpop.f32.mrb[27].mxu0  ;;  %v5344_v62 = vpop.eup %5343  ;;  %3575 = vst.msk [vmem:[%s6796_s8 + $0x40] sm:$0xff] %vm3566_vm3, %v3542_v8  ;;  %v3455_v37 = vadd.f32 1.0, %v5342_v30  ;;  %5363 = vpow2.f32 %v4042_v4 }
 0x22c   : > { %v6875_v13 = vadd.f32 %v6708_v44, %v3295_v41  ;;  %v4984_v55 = vadd.f32 %v3203_v39, %v1870_v51  ;;  %v5346_v10 = vpop.eup %5345  ;;  %3578 = vst.msk [vmem:[%s6796_s8 + $0x58] sm:$0xff] %vm3566_vm3, %v3545_v5  ;;  %v3454_v27 = vadd.f32 1.0, %v5344_v62  ;;  %5365 = vpow2.f32 %v4041_v32  ;;  %v4653_v58 = vpop.f32.mrb[28].mxu1 }
 0x22d   : > { %v4044_v34 = vmul.f32 -1.442695, %v6870_v11  ;;  %v3298_v63 = vmul.f32 %v4983_v52, %v6703_v50  ;;  %v5348_v9 = vpop.eup %5347  ;;  %v3544_v6 = vmul.f32 %v5346_v10, %v6767_v48  ;;  %5367 = vrcp.f32 %v3455_v37  ;;  %v4913_v29 = vpop.f32.mrb[28].mxu0 }
 0x22e   : > { %v4043_v46 = vmul.f32 -1.442695, %v6875_v13  ;;  %v3297_v43 = vmul.f32 %v4984_v55, %v6703_v50  ;;  %v1880_v40 = vpop.f32.mrb[29].mxu1  ;;  %v5350_v35 = vpop.eup %5349  ;;  %v3547_v16 = vmul.f32 %v5348_v9, %v6778_v28  ;;  %5369 = vrcp.f32 %v3454_v27 }
 0x22f   : > { %v6886_v23 = vadd.f32 %v6708_v44, %v3298_v63  ;;  %v4985_v22 = vadd.f32 %v4913_v29, %v4653_v58  ;;  %v3213_v20 = vpop.f32.mrb[29].mxu0  ;;  %v5352_v24 = vpop.eup %5351  ;;  %3577 = vst.msk [vmem:[%s6796_s8 + $0x50] sm:$0xff] %vm3566_vm3, %v3544_v6  ;;  %v3457_v48 = vadd.f32 1.0, %v5350_v35  ;;  %5371 = vpow2.f32 %v4044_v34 }
 0x230   : > { %v6891_v18 = vadd.f32 %v6708_v44, %v3297_v43  ;;  %v4986_v21 = vadd.f32 %v3213_v20, %v1880_v40  ;;  %v5354_v36 = vpop.eup %5353  ;;  %3580 = vst.msk [vmem:[%s6796_s8 + $0x68] sm:$0xff] %vm3566_vm3, %v3547_v16  ;;  %v3546_v28 = vmul.f32 %v5352_v24, %v6781_v12  ;;  %5373 = vpow2.f32 %v4043_v46  ;;  %v4656_v59 = vpop.f32.mrb[30].mxu1 }
 0x231   : > { %v4046_v42 = vmul.f32 -1.442695, %v6886_v23  ;;  %v3300_v53 = vmul.f32 %v4985_v22, %v6703_v50  ;;  %v5356_v3 = vpop.eup %5355  ;;  %5375 = vrcp.f32 %v3457_v48  ;;  %v3456_v14 = vadd.f32 1.0, %v5354_v36  ;;  %v4916_v45 = vpop.f32.mrb[30].mxu0 }
 0x232   : > { %v4045_v49 = vmul.f32 -1.442695, %v6891_v18  ;;  %v3299_v15 = vmul.f32 %v4986_v21, %v6703_v50  ;;  %v1890_v25 = vpop.f32.mrb[31].mxu1  ;;  %v5358_v38 = vpop.eup %5357  ;;  %3579 = vst.msk [vmem:[%s6796_s8 + $0x60] sm:$0xff] %vm3566_vm3, %v3546_v28  ;;  %v3459_v1 = vadd.f32 1.0, %v5356_v3  ;;  %v4987_v4 = vadd.f32 %v4916_v45, %v4656_v59 }
 0x233   : > { %5377 = vpow2.f32 %v4046_v42  ;;  %v6903_v12 = vadd.f32 %v6708_v44, %v3300_v53  ;;  %v3223_v60 = vpop.f32.mrb[31].mxu0  ;;  %v5360_v61 = vpop.eup %5359  ;;  %v3458_v57 = vadd.f32 1.0, %v5358_v38 }
 0x234   : > { %5379 = vrcp.f32 %v3456_v14  ;;  %v6906_v8 = vadd.f32 %v6708_v44, %v3299_v15  ;;  %v4988_v32 = vadd.f32 %v3223_v60, %v1890_v25  ;;  %v5362_v41 = vpop.eup %5361  ;;  %v3549_v47 = vmul.f32 %v5360_v61, %v6789_v31 }
 0x235   : > { %5381 = vrcp.f32 %v3459_v1  ;;  %v4048_v51 = vmul.f32 -1.442695, %v6903_v12  ;;  %v3302_v30 = vmul.f32 %v4987_v4, %v6703_v50  ;;  %v5364_v5 = vpop.eup %5363  ;;  %v3548_v52 = vmul.f32 %v5362_v41, %v6793_v54 }
 0x236   : > { %5383 = vrcp.f32 %v3458_v57  ;;  %v3301_v39 = vmul.f32 %v4988_v32, %v6703_v50  ;;  %v5366_v62 = vpop.eup %5365  ;;  %3582 = vst.msk [vmem:[%s6796_s8 + $0x78] sm:$0xff] %vm3566_vm3, %v3549_v47  ;;  %v3461_v37 = vadd.f32 1.0, %v5364_v5  ;;  %v4047_v55 = vmul.f32 -1.442695, %v6906_v8 }
 0x237   : > { %5385 = vpow2.f32 %v4045_v49  ;;  %v6917_v31 = vadd.f32 %v6708_v44, %v3302_v30  ;;  %v5368_v10 = vpop.eup %5367  ;;  %3581 = vst.msk [vmem:[%s6796_s8 + $0x70] sm:$0xff] %vm3566_vm3, %v3548_v52  ;;  %v3460_v27 = vadd.f32 1.0, %v5366_v62 }
 0x238   : > { %5387 = vpow2.f32 %v4048_v51  ;;  %v6922_v54 = vadd.f32 %v6708_v44, %v3301_v39  ;;  %v5370_v50 = vpop.eup %5369  ;;  %v3551_v34 = vmul.f32 %v5368_v10, %v6808_v33 }
 0x239   : > { %5389 = vrcp.f32 %v3461_v37  ;;  %v4050_v63 = vmul.f32 -1.442695, %v6917_v31  ;;  %v5372_v58 = vpop.eup %5371  ;;  %v3550_v9 = vmul.f32 %v5370_v50, %v6812_v2 }
 0x23a   : > { %5391 = vrcp.f32 %v3460_v27  ;;  %v5374_v6 = vpop.eup %5373  ;;  %3584 = vst.msk [vmem:[%s6796_s8 + $0x88] sm:$0xff] %vm3566_vm3, %v3551_v34  ;;  %v3463_v46 = vadd.f32 1.0, %v5372_v58  ;;  %v4049_v43 = vmul.f32 -1.442695, %v6922_v54 }
 0x23b   : > { %5393 = vpow2.f32 %v4047_v55  ;;  %v5376_v44 = vpop.eup %5375  ;;  %3583 = vst.msk [vmem:[%s6796_s8 + $0x80] sm:$0xff] %vm3566_vm3, %v3550_v9  ;;  %v3462_v29 = vadd.f32 1.0, %v5374_v6 }
 0x23c   : > { %5395 = vpow2.f32 %v4050_v63  ;;  %v3553_v40 = vmul.f32 %v5376_v44, %v6824_v0 }
 0x23d   : > { %v5378_v33 = vpop.eup %5377  ;;  %5397 = vrcp.f32 %v3463_v46 }
 0x23e   : > { %v5380_v2 = vpop.eup %5379  ;;  %5399 = vrcp.f32 %v3462_v29  ;;  %v3465_v35 = vadd.f32 1.0, %v5378_v33  ;;  %3586 = vst.msk [vmem:[%s6796_s8 + $0x98] sm:$0xff] %vm3566_vm3, %v3553_v40 }
 0x23f   : > { %v5382_v16 = vpop.eup %5381  ;;  %v3552_v22 = vmul.f32 %v5380_v2, %v6828_v56  ;;  %5401 = vpow2.f32 %v4049_v43 }
 0x240   : > { %v5384_v20 = vpop.eup %5383  ;;  %v3555_v24 = vmul.f32 %v5382_v16, %v6840_v17  ;;  %5403 = vrcp.f32 %v3465_v35 }
 0x241   : > { %v5386_v48 = vpop.eup %5385  ;;  %3585 = vst.msk [vmem:[%s6796_s8 + $0x90] sm:$0xff] %vm3566_vm3, %v3552_v22  ;;  %v3554_v0 = vmul.f32 %v5384_v20, %v6843_v26 }
 0x242   : > { %v5388_v21 = vpop.eup %5387  ;;  %3588 = vst.msk [vmem:[%s6796_s8 + $0xa8] sm:$0xff] %vm3566_vm3, %v3555_v24  ;;  %v3464_v36 = vadd.f32 1.0, %v5386_v48 }
 0x243   : > { %v5390_v28 = vpop.eup %5389  ;;  %3587 = vst.msk [vmem:[%s6796_s8 + $0xa0] sm:$0xff] %vm3566_vm3, %v3554_v0  ;;  %v3467_v56 = vadd.f32 1.0, %v5388_v21 }
 0x244   : > { %v5392_v42 = vpop.eup %5391  ;;  %v3557_v53 = vmul.f32 %v5390_v28, %v6854_v7  ;;  %5405 = vrcp.f32 %v3464_v36 }
 0x245   : > { %v5394_v17 = vpop.eup %5393  ;;  %v3556_v59 = vmul.f32 %v5392_v42, %v6859_v19  ;;  %5407 = vrcp.f32 %v3467_v56 }
 0x246   : > { %v5396_v26 = vpop.eup %5395  ;;  %3590 = vst.msk [vmem:[%s6796_s8 + $0xb8] sm:$0xff] %vm3566_vm3, %v3557_v53  ;;  %v3466_v3 = vadd.f32 1.0, %v5394_v17 }
 0x247   : > { %v5398_v14 = vpop.eup %5397  ;;  %3589 = vst.msk [vmem:[%s6796_s8 + $0xb0] sm:$0xff] %vm3566_vm3, %v3556_v59  ;;  %v3469_v49 = vadd.f32 1.0, %v5396_v26 }
 0x248   : > { %v5400_v15 = vpop.eup %5399  ;;  %v3559_v45 = vmul.f32 %v5398_v14, %v6870_v11  ;;  %5409 = vrcp.f32 %v3466_v3 }
 0x249   : > { %v5402_v7 = vpop.eup %5401  ;;  %v3558_v19 = vmul.f32 %v5400_v15, %v6875_v13  ;;  %5411 = vrcp.f32 %v3469_v49 }
 0x24a   : > { %v5404_v25 = vpop.eup %5403  ;;  %3592 = vst.msk [vmem:[%s6796_s8 + $0xc8] sm:$0xff] %vm3566_vm3, %v3559_v45  ;;  %v3468_v38 = vadd.f32 1.0, %v5402_v7 }
 0x24b   : > { %3591 = vst.msk [vmem:[%s6796_s8 + $0xc0] sm:$0xff] %vm3566_vm3, %v3558_v19  ;;  %v3561_v1 = vmul.f32 %v5404_v25, %v6886_v23 }
 0x24c   : > { %5413 = vrcp.f32 %v3468_v38 }
 0x24d   : > { %3594 = vst.msk [vmem:[%s6796_s8 + $0xd8] sm:$0xff] %vm3566_vm3, %v3561_v1 }
 0x24e   : > { %v5406_v11 = vpop.eup %5405 }
 0x24f   : > { %v5408_v4 = vpop.eup %5407  ;;  %v3560_v13 = vmul.f32 %v5406_v11, %v6891_v18 }
 0x250   : > { %v3563_v60 = vmul.f32 %v5408_v4, %v6903_v12 }
 0x251   : > { %3593 = vst.msk [vmem:[%s6796_s8 + $0xd0] sm:$0xff] %vm3566_vm3, %v3560_v13 }
 0x252   : > { %v5410_v61 = vpop.eup %5409  ;;  %3596 = vst.msk [vmem:[%s6796_s8 + $0xe8] sm:$0xff] %vm3566_vm3, %v3563_v60 }
 0x253   : > { %v5412_v57 = vpop.eup %5411  ;;  %v3562_v23 = vmul.f32 %v5410_v61, %v6906_v8 }
 0x254   : > { %v3565_v32 = vmul.f32 %v5412_v57, %v6917_v31 }
 0x255   : > { %3595 = vst.msk [vmem:[%s6796_s8 + $0xe0] sm:$0xff] %vm3566_vm3, %v3562_v23 }
 0x256   : > { %v5414_v18 = vpop.eup %5413  ;;  %3598 = vst.msk [vmem:[%s6796_s8 + $0xf8] sm:$0xff] %vm3566_vm3, %v3565_v32 }
 0x257   : > { %v3564_v12 = vmul.f32 %v5414_v18, %v6922_v54 }
 0x259   : > { %3597 = vst.msk [vmem:[%s6796_s8 + $0xf0] sm:$0xff] %vm3566_vm3, %v3564_v12 }
 0x25a   : > { %5428 = shalt.err (!%p5425_p3)
}
 0x25b   : > { %s5429_s23 = scalar_lea.hbm %s6976_s13, 4096  ;;  %s5433_s30 = scalar_lea.hbm %s7031_s5, 8192 }
 0x25c   : > { %p5430_p4 = scmp.ne.s32.totalorder %s6976_s13, %s5429_s23  ;;  %p5434_p9 = scmp.lt.u32.totalorder %s6976_s13, %s7031_s5 }
 0x25d   : > { %p5435_p10 = scmp.lt.u32.totalorder %s5433_s30, %s5429_s23  ;;  %p5437_p12 = scmp.lt.u32.totalorder %s5429_s23, %s6976_s13 }
 0x25e   : > { %p5431_p7 = pnand %p5430_p4, %p5550_p5 }
 0x25f   : > { %p5436_p11 = por %p5435_p10, %p5434_p9 }
 0x260   : > { %p5432_p8 = pneg %p5431_p7 }
 0x261   : > { %p5438_p13 = por %p5437_p12, %p5436_p11 }
 0x263   : > { %p5439_p0 = pnand %p5438_p13, %p5432_p8 }
 0x265   : > { %5442 = shalt.err (!%p5439_p0)
}
 0x266   : > { %s5480_s8 = smov 128   ;;  %s5481_s9 = smov 8  }
 0x267   : > { %5246 = dma.vmem_to_hbm [thread:$0]  (%p5550_p5), %s6978_s10, 4096, %s6976_s13, %s6985_s22, %s5480_s8, %s5480_s8, %s5481_s9  }
 0x268 PF: > { %p5252_p1 = scmp.ge.s32.totalorder %s5477_s21, 2  ;;  %s3628_s11 = sand.u32 1, %s5465_s18  }
 0x269   : > { %s3629_s12 = scalar_lea.sflag [#allocation3], %s3628_s11 }
 0x26a   : > { %p5249_p2 = pnand %p5252_p1, %p5554_p6 }
 0x26c   : > { %5460 = dma.done.wait (!%p5249_p2), %s3629_s12, 4096  }
 0x26d   : > { %5462 = vsyncadd (!%p5249_p2), %s3629_s12, 4294963200  ;;  %p15_p3 = scmp.ge.s32.totalorder %s5537_s24, 4   ;;  %s7310_s18 = smov %s5469_s19 }
 0x26e   : > { %s7311_s19 = smov %s5473_s20  ;;  %s7312_s20 = smov %s5548_s27 }
 0x26f   : > { %s7313_s21 = smov %s5537_s24  ;;  %17 = sbr.rel (!%p15_p3) target bundleno = 3 (0x3), region = 83 }
 0x276   :  { %3634 = vsyncpa [#allocation3], 1 }
 0x277   :  { %3636 = vsyncpa [#allocation3 + $0x1], 1 }

</bundles_post_ra>
